<compile_context>
chip_gen: v7x
topology: tpu7x:2x2x1
jax: 0.10.0
libtpu: 0.0.40
codegen_flags: <defaults>
</compile_context>

<pallas_src>
import functools
import math

import jax
import jax.numpy as jnp
from jax.experimental import pallas as pl
from jax.experimental.pallas import tpu as pltpu


_INV_SQRT2 = 1.0 / math.sqrt(2.0)
_DEFAULT_VMEM_LIMIT = 48 * 1024 * 1024   # safe on v7x (64 MiB physical per TC)
_K_UNTILE_MAX = 2048                     # contraction depths <= this run as one MXU pass
_VMEM_LIMIT_CACHE = [None]


def _vmem_limit_bytes():
    """Chip-aware scoped-VMEM budget: ~3/4 of per-core VMEM, capped at 112 MiB.

    v5e/v6e (128 MiB) -> 96 MiB so full per-layer weight panels stay VMEM-resident
    across the M grid; v7x (64 MiB) -> 48 MiB; fallback 48 MiB if the query fails.
    """
    if _VMEM_LIMIT_CACHE[0] is None:
        limit = _DEFAULT_VMEM_LIMIT
        try:
            cap = int(pltpu.get_tpu_info().vmem_capacity_bytes)
            if cap > 0:
                limit = max(_DEFAULT_VMEM_LIMIT, min(cap * 3 // 4, 112 * 1024 * 1024))
        except Exception:  # pragma: no cover - conservative fallback
            pass
        _VMEM_LIMIT_CACHE[0] = limit
    return _VMEM_LIMIT_CACHE[0]


def _tile(dim, pref):
    """Largest divisor of `dim` that is <= `pref` (full dim only when dim <= pref)."""
    if dim <= pref:
        return dim
    for t in range(pref, 0, -1):
        if dim % t == 0:
            return t
    return dim


def _matmul_cost(m, n, k, *, transcendentals=0, bytes_per_el=2):
    return pl.CostEstimate(
        flops=2 * m * n * k,
        transcendentals=transcendentals,
        bytes_accessed=(m * k + k * n + m * n) * bytes_per_el)


# ----------------------------------------------------------------------------
# Kernels
# ----------------------------------------------------------------------------
def _qkv_kernel(x_ref, w_ref, b_ref, q_ref, k_ref, v_ref, *, d_model, scale):
    """Fused QKV projection, single full-depth contraction (K = d_model untiled).

    x:(tm,K) @ w:(K,3D) + b -> q/k/v:(tm,D); q pre-scaled by 1/sqrt(head_dim).
    """
    y = jnp.dot(x_ref[...], w_ref[...], preferred_element_type=jnp.float32) + b_ref[...]
    q_ref[...] = (y[:, :d_model] * scale).astype(q_ref.dtype)
    k_ref[...] = y[:, d_model:2 * d_model].astype(k_ref.dtype)
    v_ref[...] = y[:, 2 * d_model:].astype(v_ref.dtype)


def _linear_kernel(x_ref, w_ref, b_ref, o_ref, *, act):
    """y = x @ w + b (+ exact erf GELU).  Grid (M, N); K untiled (full-depth MXU pass)."""
    y = jnp.dot(x_ref[...], w_ref[...], preferred_element_type=jnp.float32) + b_ref[...]
    if act == "gelu":
        # PyTorch F.gelu(approximate='none') == exact erf gelu
        y = 0.5 * y * (1.0 + jax.lax.erf(y * _INV_SQRT2))
    o_ref[...] = y.astype(o_ref.dtype)


def _linear_add_ln_kernel(x_ref, w_ref, b_ref, res_ref, g_ref, beta_ref, o_ref, *, eps):
    """y = LayerNorm(res + x @ w + b).  Grid (M,); K untiled, N = full d_model."""
    h = (jnp.dot(x_ref[...], w_ref[...], preferred_element_type=jnp.float32)
         + b_ref[...] + res_ref[...].astype(jnp.float32))
    mean = jnp.mean(h, axis=-1, keepdims=True)
    d = h - mean
    var = jnp.mean(d * d, axis=-1, keepdims=True)
    inv = jax.lax.rsqrt(var + eps)
    o_ref[...] = (d * inv * g_ref[...] + beta_ref[...]).astype(o_ref.dtype)


def _linear_add_ln_acc_kernel(x_ref, w_ref, b_ref, res_ref, g_ref, beta_ref, o_ref,
                              acc_ref, *, eps):
    """K-tiled LayerNorm(res + x @ w + b) (used when K > _K_UNTILE_MAX, e.g. FFN-down)."""
    ki = pl.program_id(1)

    @pl.when(ki == 0)
    def _():
        acc_ref[...] = jnp.zeros_like(acc_ref)

    acc_ref[...] += jnp.dot(x_ref[...], w_ref[...], preferred_element_type=jnp.float32)

    @pl.when(ki == pl.num_programs(1) - 1)
    def _():
        h = acc_ref[...] + b_ref[...] + res_ref[...].astype(jnp.float32)
        mean = jnp.mean(h, axis=-1, keepdims=True)
        d = h - mean
        var = jnp.mean(d * d, axis=-1, keepdims=True)
        inv = jax.lax.rsqrt(var + eps)
        o_ref[...] = (d * inv * g_ref[...] + beta_ref[...]).astype(o_ref.dtype)


def _mha_kernel(q_ref, k_ref, v_ref, o_ref, m_ref, l_ref, acc_ref, *,
                num_heads, head_dim):
    """Flash-style multi-head attention, all heads packed per block (lane-dense IO).

    q/k/v blocks: (1, tq|tkv, D);  o block: (1, tq, D)
    scratch: m,l: (H, tq, 1) f32;  acc: (H, tq, Dh) f32
    q is pre-scaled by 1/sqrt(Dh) in the QKV projection.
    """
    ki = pl.program_id(2)

    @pl.when(ki == 0)
    def _():
        m_ref[...] = jnp.full_like(m_ref, -jnp.inf)
        l_ref[...] = jnp.zeros_like(l_ref)
        acc_ref[...] = jnp.zeros_like(acc_ref)

    q = q_ref[0]   # (tq, D)
    k = k_ref[0]   # (tkv, D)
    v = v_ref[0]   # (tkv, D)

    for h in range(num_heads):            # static head loop; all slices static
        lo, hi = h * head_dim, (h + 1) * head_dim
        qh = q[:, lo:hi]                  # (tq, Dh)
        kh = k[:, lo:hi]                  # (tkv, Dh)
        vh = v[:, lo:hi]                  # (tkv, Dh)

        # contract the last axis of both operands directly -> no kh.T relayout
        s = jax.lax.dot_general(qh, kh, (((1,), (1,)), ((), ())),
                                preferred_element_type=jnp.float32)   # (tq, tkv)
        m_prev = m_ref[h]                                             # (tq, 1)
        m_new = jnp.maximum(m_prev, jnp.max(s, axis=-1, keepdims=True))
        alpha = jnp.exp(m_prev - m_new)
        p = jnp.exp(s - m_new)
        l_ref[h] = alpha * l_ref[h] + jnp.sum(p, axis=-1, keepdims=True)
        acc_ref[h] = alpha * acc_ref[h] + jnp.dot(
            p.astype(vh.dtype), vh, preferred_element_type=jnp.float32)
        m_ref[h] = m_new

    @pl.when(ki == pl.num_programs(2) - 1)
    def _():
        # Normalize and store in head PAIRS: each store is 2*head_dim lanes wide and
        # 2*head_dim-aligned (= 128-lane dense for head_dim=64).  No full-width
        # (tq, D) concatenate relayout.
        # NOTE: pl.reciprocal(approx=True) uses the EUP approximate reciprocal;
        # softmax normalization deviates at ~1e-3 relative vs exact division.
        h = 0
        while h < num_heads:
            p0 = acc_ref[h] * pl.reciprocal(l_ref[h], approx=True)
            if h + 1 < num_heads:
                p1 = acc_ref[h + 1] * pl.reciprocal(l_ref[h + 1], approx=True)
                o_ref[0, :, h * head_dim:(h + 2) * head_dim] = jnp.concatenate(
                    [p0, p1], axis=-1).astype(o_ref.dtype)
                h += 2
            else:
                o_ref[0, :, h * head_dim:(h + 1) * head_dim] = p0.astype(o_ref.dtype)
                h += 1


# ----------------------------------------------------------------------------
# Wrappers
# ----------------------------------------------------------------------------
def qkv_projection(x, w, b, num_heads, *, tm=256):
    """x: (M, D) -> q, k, v each (M, D); q pre-scaled by 1/sqrt(head_dim).

    K = d_model is untiled; the weight block index is constant over the M grid, so
    the (K, 3D) panel stays VMEM resident (no re-streaming per M tile).
    tm=256 (not 512) because the f32 intermediate is 3x-wide (tm, 3D).
    """
    m, kdim = x.shape
    d3 = w.shape[1]
    dm = d3 // 3
    scale = 1.0 / math.sqrt(dm // num_heads)
    tm = _tile(m, tm)
    out_sds = jax.ShapeDtypeStruct((m, dm), x.dtype)

    def out_spec():
        return pl.BlockSpec((tm, dm), lambda i: (i, 0))

    return pl.pallas_call(
        functools.partial(_qkv_kernel, d_model=dm, scale=scale),
        out_shape=(out_sds, out_sds, out_sds),
        grid=(m // tm,),
        in_specs=[
            pl.BlockSpec((tm, kdim), lambda i: (i, 0)),
            pl.BlockSpec((kdim, d3), lambda i: (0, 0)),   # constant -> VMEM resident
            pl.BlockSpec((1, d3), lambda i: (0, 0)),
        ],
        out_specs=(out_spec(), out_spec(), out_spec()),
        compiler_params=pltpu.CompilerParams(
            dimension_semantics=("parallel",),
            vmem_limit_bytes=_vmem_limit_bytes()),
        cost_estimate=_matmul_cost(m, d3, kdim),
    )(x, w, b.reshape(1, d3))


def linear(x, w, b, act=None, *, tm=512, tn=1024):
    """Tiled y = x @ w + b (+gelu).  x: (M, K), w: (K, N), b: (N,).  K untiled."""
    m, kdim = x.shape
    n = w.shape[1]
    tm = _tile(m, tm)
    tn = _tile(n, tn)
    transc = m * n if act == "gelu" else 0
    return pl.pallas_call(
        functools.partial(_linear_kernel, act=act),
        out_shape=jax.ShapeDtypeStruct((m, n), x.dtype),
        grid=(m // tm, n // tn),
        in_specs=[
            pl.BlockSpec((tm, kdim), lambda i, j: (i, 0)),
            pl.BlockSpec((kdim, tn), lambda i, j: (0, j)),
            pl.BlockSpec((1, tn), lambda i, j: (0, j)),
        ],
        out_specs=pl.BlockSpec((tm, tn), lambda i, j: (i, j)),
        compiler_params=pltpu.CompilerParams(
            dimension_semantics=("parallel", "parallel"),
            vmem_limit_bytes=_vmem_limit_bytes()),
        cost_estimate=_matmul_cost(m, n, kdim, transcendentals=transc),
    )(x, w, b.reshape(1, n))


def linear_add_layernorm(x, w, b, res, gamma, beta, *, eps=1e-5, tm=512, tk_pref=1024):
    """LayerNorm(res + x @ w + b).  N (= d_model) is untiled for the LN reduction.

    K untiled when K <= _K_UNTILE_MAX (out-proj, K = d_model); otherwise K-tiled
    at tk<=1024 with an f32 VMEM accumulator (FFN-down, K = d_ffn).
    """
    m, kdim = x.shape
    n = w.shape[1]
    tm = _tile(m, tm)
    args = (x, w, b.reshape(1, n), res, gamma.reshape(1, n), beta.reshape(1, n))
    cost = _matmul_cost(m, n, kdim)

    if kdim <= _K_UNTILE_MAX:
        return pl.pallas_call(
            functools.partial(_linear_add_ln_kernel, eps=eps),
            out_shape=jax.ShapeDtypeStruct((m, n), res.dtype),
            grid=(m // tm,),
            in_specs=[
                pl.BlockSpec((tm, kdim), lambda i: (i, 0)),
                pl.BlockSpec((kdim, n), lambda i: (0, 0)),   # constant -> VMEM resident
                pl.BlockSpec((1, n), lambda i: (0, 0)),
                pl.BlockSpec((tm, n), lambda i: (i, 0)),     # residual
                pl.BlockSpec((1, n), lambda i: (0, 0)),
                pl.BlockSpec((1, n), lambda i: (0, 0)),
            ],
            out_specs=pl.BlockSpec((tm, n), lambda i: (i, 0)),
            compiler_params=pltpu.CompilerParams(
                dimension_semantics=("parallel",),
                vmem_limit_bytes=_vmem_limit_bytes()),
            cost_estimate=cost,
        )(*args)

    tk = _tile(kdim, tk_pref)
    return pl.pallas_call(
        functools.partial(_linear_add_ln_acc_kernel, eps=eps),
        out_shape=jax.ShapeDtypeStruct((m, n), res.dtype),
        grid=(m // tm, kdim // tk),
        in_specs=[
            pl.BlockSpec((tm, tk), lambda i, k: (i, k)),
            pl.BlockSpec((tk, n), lambda i, k: (k, 0)),
            pl.BlockSpec((1, n), lambda i, k: (0, 0)),
            pl.BlockSpec((tm, n), lambda i, k: (i, 0)),      # residual (constant over k)
            pl.BlockSpec((1, n), lambda i, k: (0, 0)),
            pl.BlockSpec((1, n), lambda i, k: (0, 0)),
        ],
        out_specs=pl.BlockSpec((tm, n), lambda i, k: (i, 0)),
        scratch_shapes=[pltpu.VMEM((tm, n), jnp.float32)],
        compiler_params=pltpu.CompilerParams(
            dimension_semantics=("parallel", "arbitrary"),
            vmem_limit_bytes=_vmem_limit_bytes()),
        cost_estimate=cost,
    )(*args)


def attention(q, k, v, num_heads, *, tq=256, tkv=512):
    """q, k, v: (B, S, D) with all heads packed in D.  Flash attention, no mask."""
    bsz, s, d = q.shape
    dh = d // num_heads
    tq = _tile(s, tq)
    tkv = _tile(s, tkv)
    cost = pl.CostEstimate(
        flops=4 * bsz * s * s * d,                 # QK^T + PV
        transcendentals=bsz * num_heads * s * s,   # softmax exp
        bytes_accessed=4 * bsz * s * d * 2)        # q,k,v read + o write (bf16)
    return pl.pallas_call(
        functools.partial(_mha_kernel, num_heads=num_heads, head_dim=dh),
        out_shape=jax.ShapeDtypeStruct((bsz, s, d), q.dtype),
        grid=(bsz, s // tq, s // tkv),
        in_specs=[
            pl.BlockSpec((1, tq, d), lambda b, qi, ki: (b, qi, 0)),
            pl.BlockSpec((1, tkv, d), lambda b, qi, ki: (b, ki, 0)),
            pl.BlockSpec((1, tkv, d), lambda b, qi, ki: (b, ki, 0)),
        ],
        out_specs=pl.BlockSpec((1, tq, d), lambda b, qi, ki: (b, qi, 0)),
        scratch_shapes=[
            pltpu.VMEM((num_heads, tq, 1), jnp.float32),    # running max
            pltpu.VMEM((num_heads, tq, 1), jnp.float32),    # running denom
            pltpu.VMEM((num_heads, tq, dh), jnp.float32),   # output accumulator
        ],
        compiler_params=pltpu.CompilerParams(
            dimension_semantics=("parallel", "parallel", "arbitrary"),
            vmem_limit_bytes=_vmem_limit_bytes()),
        cost_estimate=cost,
    )(q, k, v)


# ----------------------------------------------------------------------------
# Transformer encoder (post-norm, gelu), PyTorch TransformerEncoderLayer semantics
# ----------------------------------------------------------------------------
def init_params(key, num_layers, d_model, d_ffn, compute_dtype=jnp.bfloat16):
    params = []
    for _ in range(num_layers):
        keys = jax.random.split(key, 5)
        key = keys[0]
        layer = {
            # weights stored pre-transposed: (in_features, out_features), bf16 for the MXU
            "w_in": (jax.random.normal(keys[1], (d_model, 3 * d_model), jnp.float32)
                     * 0.02).astype(compute_dtype),
            "b_in": jnp.zeros((3 * d_model,), jnp.float32),
            "w_out": (jax.random.normal(keys[2], (d_model, d_model), jnp.float32)
                      * 0.02).astype(compute_dtype),
            "b_out": jnp.zeros((d_model,), jnp.float32),
            "w1": (jax.random.normal(keys[3], (d_model, d_ffn), jnp.float32)
                   * 0.02).astype(compute_dtype),
            "b1": jnp.zeros((d_ffn,), jnp.float32),
            "w2": (jax.random.normal(keys[4], (d_ffn, d_model), jnp.float32)
                   * 0.02).astype(compute_dtype),
            "b2": jnp.zeros((d_model,), jnp.float32),
            "g1": jnp.ones((d_model,), jnp.float32),
            "be1": jnp.zeros((d_model,), jnp.float32),
            "g2": jnp.ones((d_model,), jnp.float32),
            "be2": jnp.zeros((d_model,), jnp.float32),
        }
        params.append(layer)
    return params


def encoder_layer(x2d, p, num_heads, *, batch, seq):
    """x2d: (B*S, D) token-major -> (B*S, D).  Post-norm: LN(x+MHA(x)), LN(h+FFN(h))."""
    m, d = x2d.shape

    # --- fused QKV projection (3 outputs, q pre-scaled) ---
    q, k, v = qkv_projection(x2d, p["w_in"], p["b_in"], num_heads)      # (B*S, D) x3

    # free contiguous reshapes (no HBM transpose): (B*S, D) -> (B, S, D)
    q = q.reshape(batch, seq, d)
    k = k.reshape(batch, seq, d)
    v = v.reshape(batch, seq, d)

    attn = attention(q, k, v, num_heads)                                # (B, S, D)
    attn2d = attn.reshape(m, d)                                         # (B*S, D)

    # out-proj with fused residual-add + LayerNorm epilogue (K = d_model, untiled)
    h = linear_add_layernorm(attn2d, p["w_out"], p["b_out"], x2d, p["g1"], p["be1"])

    # --- feed-forward ---
    ff = linear(h, p["w1"], p["b1"], act="gelu")                        # (B*S, d_ffn)
    out = linear_add_layernorm(ff, p["w2"], p["b2"], h, p["g2"], p["be2"])
    return out


def transformer_encoder(x, params, num_heads, compute_dtype=jnp.bfloat16):
    """x: (S, B, D) -> (S, B, D).  Single layout transpose pair for the whole stack."""
    s, b, d = x.shape
    orig_dtype = x.dtype
    h = jnp.transpose(x, (1, 0, 2)).astype(compute_dtype)   # (B, S, D), bf16
    h2d = h.reshape(b * s, d)                                # token-major (B*S, D)
    for p in params:
        h2d = encoder_layer(h2d, p, num_heads, batch=b, seq=s)
    out = h2d.reshape(b, s, d)
    return jnp.transpose(out, (1, 0, 2)).astype(orig_dtype)  # back to (S, B, D)


# ----------------------------------------------------------------------------
if __name__ == "__main__":
    # small, forward-consistent shapes (module defaults 12/768/12/3072 scaled down)
    num_layers = 2
    d_model = 32
    num_heads = 4
    d_ffn = 64
    seq_len = 8
    batch = 2

    key = jax.random.PRNGKey(0)
    kx, kp = jax.random.split(key)
    # layout: (S, B, D) — PyTorch TransformerEncoderLayer default (batch_first=False)
    x = jax.random.normal(kx, (seq_len, batch, d_model), jnp.float32)
    params = init_params(kp, num_layers, d_model, d_ffn)

    fwd = jax.jit(functools.partial(transformer_encoder, num_heads=num_heads))
    y = fwd(x, params)
    jax.block_until_ready(y)
    assert y.shape == (seq_len, batch, d_model)
    assert bool(jnp.all(jnp.isfinite(y)))
    print("KERNEL_OK")
</pallas_src>

<mosaic_0001>
module attributes {stable_mosaic.version = 11 : i64} {
  func.func @_qkv_kernel(%arg0: i32, %arg1: memref<16x32xbf16, #tpu.memory_space<vmem>>, %arg2: memref<32x96xbf16, #tpu.memory_space<vmem>>, %arg3: memref<1x96xf32, #tpu.memory_space<vmem>>, %arg4: memref<16x32xbf16, #tpu.memory_space<vmem>>, %arg5: memref<16x32xbf16, #tpu.memory_space<vmem>>, %arg6: memref<16x32xbf16, #tpu.memory_space<vmem>>) attributes {dimension_semantics = [#tpu.dimension_semantics<parallel>], iteration_bounds = array<i64: 1>, scalar_prefetch = 0 : i64, scratch_operands = 0 : i64, tpu.core_type = #tpu.core_type<tc>, window_params = [{transform_indices = @transform_0, window_bounds = array<i64: 16, 32>}, {pipeline_mode = #tpu.pipeline_mode<synchronous>, transform_indices = @transform_1, window_bounds = array<i64: 32, 96>}, {pipeline_mode = #tpu.pipeline_mode<synchronous>, transform_indices = @transform_2, window_bounds = array<i64: 1, 96>}, {transform_indices = @transform_3, window_bounds = array<i64: 16, 32>}, {transform_indices = @transform_4, window_bounds = array<i64: 16, 32>}, {transform_indices = @transform_5, window_bounds = array<i64: 16, 32>}]} {
    %c0 = arith.constant 0 : index
    %c0_0 = arith.constant 0 : index
    %0 = vector.load %arg1[%c0, %c0_0] : memref<16x32xbf16, #tpu.memory_space<vmem>>, vector<16x32xbf16>
    %c0_1 = arith.constant 0 : index
    %c0_2 = arith.constant 0 : index
    %1 = vector.load %arg2[%c0_1, %c0_2] : memref<32x96xbf16, #tpu.memory_space<vmem>>, vector<32x96xbf16>
    %cst = arith.constant dense<0.000000e+00> : vector<16x96xf32>
    %2 = tpu.matmul %0, %1, %cst {dimension_numbers = #tpu.dot_dimension_numbers<[1], [0], [0], [1], [0, 0, 1, 1], [], []>} : vector<16x32xbf16>, vector<32x96xbf16>, vector<16x96xf32> -> vector<16x96xf32>
    %c0_3 = arith.constant 0 : index
    %c0_4 = arith.constant 0 : index
    %3 = vector.load %arg3[%c0_3, %c0_4] : memref<1x96xf32, #tpu.memory_space<vmem>>, vector<1x96xf32>
    %4 = vector.broadcast %3 : vector<1x96xf32> to vector<16x96xf32>
    %5 = arith.addf %2, %4 : vector<16x96xf32>
    %6 = vector.extract_strided_slice %5 {offsets = [0, 0], sizes = [16, 32], strides = [1, 1]} : vector<16x96xf32> to vector<16x32xf32>
    %cst_5 = arith.constant 0.353553385 : f32
    %7 = vector.broadcast %cst_5 : f32 to vector<16x32xf32>
    %8 = arith.mulf %6, %7 : vector<16x32xf32>
    %9 = arith.truncf %8 : vector<16x32xf32> to vector<16x32xbf16>
    %c0_6 = arith.constant 0 : index
    %c0_7 = arith.constant 0 : index
    %10 = vector.load %arg4[%c0_6, %c0_7] : memref<16x32xbf16, #tpu.memory_space<vmem>>, vector<16x32xbf16>
    tpu.vector_store %arg4[%c0_6, %c0_7], %9 {strides = array<i32>} : memref<16x32xbf16, #tpu.memory_space<vmem>>, vector<16x32xbf16>,
    %11 = vector.extract_strided_slice %5 {offsets = [0, 32], sizes = [16, 32], strides = [1, 1]} : vector<16x96xf32> to vector<16x32xf32>
    %12 = arith.truncf %11 : vector<16x32xf32> to vector<16x32xbf16>
    %c0_8 = arith.constant 0 : index
    %c0_9 = arith.constant 0 : index
    %13 = vector.load %arg5[%c0_8, %c0_9] : memref<16x32xbf16, #tpu.memory_space<vmem>>, vector<16x32xbf16>
    tpu.vector_store %arg5[%c0_8, %c0_9], %12 {strides = array<i32>} : memref<16x32xbf16, #tpu.memory_space<vmem>>, vector<16x32xbf16>,
    %14 = vector.extract_strided_slice %5 {offsets = [0, 64], sizes = [16, 32], strides = [1, 1]} : vector<16x96xf32> to vector<16x32xf32>
    %15 = arith.truncf %14 : vector<16x32xf32> to vector<16x32xbf16>
    %c0_10 = arith.constant 0 : index
    %c0_11 = arith.constant 0 : index
    %16 = vector.load %arg6[%c0_10, %c0_11] : memref<16x32xbf16, #tpu.memory_space<vmem>>, vector<16x32xbf16>
    tpu.vector_store %arg6[%c0_10, %c0_11], %15 {strides = array<i32>} : memref<16x32xbf16, #tpu.memory_space<vmem>>, vector<16x32xbf16>,
    return
  }
  func.func @transform_0(%arg0: i32) -> (i32, i32) {
    %c0_i32 = arith.constant 0 : i32
    %c0_i32_0 = arith.constant 0 : i32
    return %arg0, %c0_i32 : i32, i32
  }
  func.func @transform_1(%arg0: i32) -> (i32, i32) {
    %c0_i32 = arith.constant 0 : i32
    %c0_i32_0 = arith.constant 0 : i32
    %c0_i32_1 = arith.constant 0 : i32
    return %c0_i32, %c0_i32_0 : i32, i32
  }
  func.func @transform_2(%arg0: i32) -> (i32, i32) {
    %c0_i32 = arith.constant 0 : i32
    %c0_i32_0 = arith.constant 0 : i32
    %c0_i32_1 = arith.constant 0 : i32
    return %c0_i32, %c0_i32_0 : i32, i32
  }
  func.func @transform_3(%arg0: i32) -> (i32, i32) {
    %c0_i32 = arith.constant 0 : i32
    %c0_i32_0 = arith.constant 0 : i32
    return %arg0, %c0_i32 : i32, i32
  }
  func.func @transform_4(%arg0: i32) -> (i32, i32) {
    %c0_i32 = arith.constant 0 : i32
    %c0_i32_0 = arith.constant 0 : i32
    return %arg0, %c0_i32 : i32, i32
  }
  func.func @transform_5(%arg0: i32) -> (i32, i32) {
    %c0_i32 = arith.constant 0 : i32
    %c0_i32_0 = arith.constant 0 : i32
    return %arg0, %c0_i32 : i32, i32
  }
}

module attributes {stable_mosaic.version = 11 : i64} {
  func.func @_mha_kernel(%arg0: i32, %arg1: i32, %arg2: i32, %arg3: memref<1x8x32xbf16, #tpu.memory_space<vmem>>, %arg4: memref<1x8x32xbf16, #tpu.memory_space<vmem>>, %arg5: memref<1x8x32xbf16, #tpu.memory_space<vmem>>, %arg6: memref<1x8x32xbf16, #tpu.memory_space<vmem>>, %arg7: memref<4x8x1xf32, #tpu.memory_space<vmem>>, %arg8: memref<4x8x1xf32, #tpu.memory_space<vmem>>, %arg9: memref<4x8x8xf32, #tpu.memory_space<vmem>>) attributes {dimension_semantics = [#tpu.dimension_semantics<parallel>, #tpu.dimension_semantics<parallel>, #tpu.dimension_semantics<arbitrary>], iteration_bounds = array<i64: 2, 1, 1>, scalar_prefetch = 0 : i64, scratch_operands = 3 : i64, tpu.core_type = #tpu.core_type<tc>, window_params = [{transform_indices = @transform_0, window_bounds = array<i64: 1, 8, 32>}, {transform_indices = @transform_1, window_bounds = array<i64: 1, 8, 32>}, {transform_indices = @transform_2, window_bounds = array<i64: 1, 8, 32>}, {transform_indices = @transform_3, window_bounds = array<i64: 1, 8, 32>}]} {
    %c0_i32 = arith.constant 0 : i32
    %0 = arith.cmpi eq, %arg2, %c0_i32 : i32
    %1 = arith.extui %0 : i1 to i32
    %c0_i32_0 = arith.constant 0 : i32
    %2 = arith.cmpi ne, %1, %c0_i32_0 : i32
    scf.if %2 {
      %cst_95 = arith.constant 0xFF800000 : f32
      %156 = vector.broadcast %cst_95 : f32 to vector<4x8x1xf32>
      %c0_96 = arith.constant 0 : index
      %c0_97 = arith.constant 0 : index
      %c0_98 = arith.constant 0 : index
      %157 = vector.load %arg7[%c0_96, %c0_97, %c0_98] : memref<4x8x1xf32, #tpu.memory_space<vmem>>, vector<4x8x1xf32>
      tpu.vector_store %arg7[%c0_96, %c0_97, %c0_98], %156 {strides = array<i32>} : memref<4x8x1xf32, #tpu.memory_space<vmem>>, vector<4x8x1xf32>,
      %cst_99 = arith.constant 0.000000e+00 : f32
      %158 = vector.broadcast %cst_99 : f32 to vector<4x8x1xf32>
      %c0_100 = arith.constant 0 : index
      %c0_101 = arith.constant 0 : index
      %c0_102 = arith.constant 0 : index
      %159 = vector.load %arg8[%c0_100, %c0_101, %c0_102] : memref<4x8x1xf32, #tpu.memory_space<vmem>>, vector<4x8x1xf32>
      tpu.vector_store %arg8[%c0_100, %c0_101, %c0_102], %158 {strides = array<i32>} : memref<4x8x1xf32, #tpu.memory_space<vmem>>, vector<4x8x1xf32>,
      %cst_103 = arith.constant 0.000000e+00 : f32
      %160 = vector.broadcast %cst_103 : f32 to vector<4x8x8xf32>
      %c0_104 = arith.constant 0 : index
      %c0_105 = arith.constant 0 : index
      %c0_106 = arith.constant 0 : index
      %161 = vector.load %arg9[%c0_104, %c0_105, %c0_106] : memref<4x8x8xf32, #tpu.memory_space<vmem>>, vector<4x8x8xf32>
      tpu.vector_store %arg9[%c0_104, %c0_105, %c0_106], %160 {strides = array<i32>} : memref<4x8x8xf32, #tpu.memory_space<vmem>>, vector<4x8x8xf32>,
    } else {
    }
    %c0 = arith.constant 0 : index
    %c0_1 = arith.constant 0 : index
    %c0_2 = arith.constant 0 : index
    %3 = vector.load %arg3[%c0, %c0_1, %c0_2] : memref<1x8x32xbf16, #tpu.memory_space<vmem>>, vector<1x8x32xbf16>
    %4 = vector.shape_cast %3 : vector<1x8x32xbf16> to vector<8x32xbf16>
    %c0_3 = arith.constant 0 : index
    %c0_4 = arith.constant 0 : index
    %c0_5 = arith.constant 0 : index
    %5 = vector.load %arg4[%c0_3, %c0_4, %c0_5] : memref<1x8x32xbf16, #tpu.memory_space<vmem>>, vector<1x8x32xbf16>
    %6 = vector.shape_cast %5 : vector<1x8x32xbf16> to vector<8x32xbf16>
    %c0_6 = arith.constant 0 : index
    %c0_7 = arith.constant 0 : index
    %c0_8 = arith.constant 0 : index
    %7 = vector.load %arg5[%c0_6, %c0_7, %c0_8] : memref<1x8x32xbf16, #tpu.memory_space<vmem>>, vector<1x8x32xbf16>
    %8 = vector.shape_cast %7 : vector<1x8x32xbf16> to vector<8x32xbf16>
    %9 = vector.extract_strided_slice %4 {offsets = [0, 0], sizes = [8, 8], strides = [1, 1]} : vector<8x32xbf16> to vector<8x8xbf16>
    %10 = vector.extract_strided_slice %6 {offsets = [0, 0], sizes = [8, 8], strides = [1, 1]} : vector<8x32xbf16> to vector<8x8xbf16>
    %11 = vector.extract_strided_slice %8 {offsets = [0, 0], sizes = [8, 8], strides = [1, 1]} : vector<8x32xbf16> to vector<8x8xbf16>
    %cst = arith.constant dense<0.000000e+00> : vector<8x8xf32>
    %12 = tpu.matmul %9, %10, %cst {dimension_numbers = #tpu.dot_dimension_numbers<[1], [1], [0], [0], [0, 0, 1, 0], [], []>} : vector<8x8xbf16>, vector<8x8xbf16>, vector<8x8xf32> -> vector<8x8xf32>
    %c0_9 = arith.constant 0 : index
    %c0_10 = arith.constant 0 : index
    %c0_11 = arith.constant 0 : index
    %13 = vector.load %arg7[%c0_9, %c0_10, %c0_11] : memref<4x8x1xf32, #tpu.memory_space<vmem>>, vector<1x8x1xf32>
    %14 = vector.shape_cast %13 : vector<1x8x1xf32> to vector<8x1xf32>
    %cst_12 = arith.constant dense<0xFF800000> : vector<8xf32>
    %15 = vector.multi_reduction <maximumf>, %12, %cst_12 [1] : vector<8x8xf32> to vector<8xf32>
    %16 = vector.shape_cast %15 : vector<8xf32> to vector<8x1xf32>
    %17 = arith.maximumf %14, %16 : vector<8x1xf32>
    %18 = arith.subf %14, %17 : vector<8x1xf32>
    %19 = math.exp %18 : vector<8x1xf32>
    %20 = vector.broadcast %17 : vector<8x1xf32> to vector<8x8xf32>
    %21 = arith.subf %12, %20 : vector<8x8xf32>
    %22 = math.exp %21 : vector<8x8xf32>
    %c0_13 = arith.constant 0 : index
    %c0_14 = arith.constant 0 : index
    %c0_15 = arith.constant 0 : index
    %23 = vector.load %arg8[%c0_13, %c0_14, %c0_15] : memref<4x8x1xf32, #tpu.memory_space<vmem>>, vector<1x8x1xf32>
    %24 = vector.shape_cast %23 : vector<1x8x1xf32> to vector<8x1xf32>
    %25 = arith.mulf %19, %24 : vector<8x1xf32>
    %cst_16 = arith.constant dense<0.000000e+00> : vector<8xf32>
    %26 = vector.multi_reduction <add>, %22, %cst_16 [1] : vector<8x8xf32> to vector<8xf32>
    %27 = vector.shape_cast %26 : vector<8xf32> to vector<8x1xf32>
    %28 = arith.addf %25, %27 : vector<8x1xf32>
    %c0_17 = arith.constant 0 : index
    %c0_18 = arith.constant 0 : index
    %c0_19 = arith.constant 0 : index
    %29 = vector.load %arg8[%c0_17, %c0_18, %c0_19] : memref<4x8x1xf32, #tpu.memory_space<vmem>>, vector<1x8x1xf32>
    %30 = vector.shape_cast %29 : vector<1x8x1xf32> to vector<8x1xf32>
    %31 = vector.shape_cast %28 : vector<8x1xf32> to vector<1x8x1xf32>
    tpu.vector_store %arg8[%c0_17, %c0_18, %c0_19], %31 {strides = array<i32>} : memref<4x8x1xf32, #tpu.memory_space<vmem>>, vector<1x8x1xf32>,
    %c0_20 = arith.constant 0 : index
    %c0_21 = arith.constant 0 : index
    %c0_22 = arith.constant 0 : index
    %32 = vector.load %arg9[%c0_20, %c0_21, %c0_22] : memref<4x8x8xf32, #tpu.memory_space<vmem>>, vector<1x8x8xf32>
    %33 = vector.shape_cast %32 : vector<1x8x8xf32> to vector<8x8xf32>
    %34 = vector.broadcast %19 : vector<8x1xf32> to vector<8x8xf32>
    %35 = arith.mulf %34, %33 : vector<8x8xf32>
    %36 = arith.truncf %22 : vector<8x8xf32> to vector<8x8xbf16>
    %cst_23 = arith.constant dense<0.000000e+00> : vector<8x8xf32>
    %37 = tpu.matmul %36, %11, %cst_23 {dimension_numbers = #tpu.dot_dimension_numbers<[1], [0], [0], [1], [0, 0, 1, 1], [], []>} : vector<8x8xbf16>, vector<8x8xbf16>, vector<8x8xf32> -> vector<8x8xf32>
    %38 = arith.addf %35, %37 : vector<8x8xf32>
    %c0_24 = arith.constant 0 : index
    %c0_25 = arith.constant 0 : index
    %c0_26 = arith.constant 0 : index
    %39 = vector.load %arg9[%c0_24, %c0_25, %c0_26] : memref<4x8x8xf32, #tpu.memory_space<vmem>>, vector<1x8x8xf32>
    %40 = vector.shape_cast %39 : vector<1x8x8xf32> to vector<8x8xf32>
    %41 = vector.shape_cast %38 : vector<8x8xf32> to vector<1x8x8xf32>
    tpu.vector_store %arg9[%c0_24, %c0_25, %c0_26], %41 {strides = array<i32>} : memref<4x8x8xf32, #tpu.memory_space<vmem>>, vector<1x8x8xf32>,
    %c0_27 = arith.constant 0 : index
    %c0_28 = arith.constant 0 : index
    %c0_29 = arith.constant 0 : index
    %42 = vector.load %arg7[%c0_27, %c0_28, %c0_29] : memref<4x8x1xf32, #tpu.memory_space<vmem>>, vector<1x8x1xf32>
    %43 = vector.shape_cast %42 : vector<1x8x1xf32> to vector<8x1xf32>
    %44 = vector.shape_cast %17 : vector<8x1xf32> to vector<1x8x1xf32>
    tpu.vector_store %arg7[%c0_27, %c0_28, %c0_29], %44 {strides = array<i32>} : memref<4x8x1xf32, #tpu.memory_space<vmem>>, vector<1x8x1xf32>,
    %45 = vector.extract_strided_slice %4 {offsets = [0, 8], sizes = [8, 8], strides = [1, 1]} : vector<8x32xbf16> to vector<8x8xbf16>
    %46 = vector.extract_strided_slice %6 {offsets = [0, 8], sizes = [8, 8], strides = [1, 1]} : vector<8x32xbf16> to vector<8x8xbf16>
    %47 = vector.extract_strided_slice %8 {offsets = [0, 8], sizes = [8, 8], strides = [1, 1]} : vector<8x32xbf16> to vector<8x8xbf16>
    %cst_30 = arith.constant dense<0.000000e+00> : vector<8x8xf32>
    %48 = tpu.matmul %45, %46, %cst_30 {dimension_numbers = #tpu.dot_dimension_numbers<[1], [1], [0], [0], [0, 0, 1, 0], [], []>} : vector<8x8xbf16>, vector<8x8xbf16>, vector<8x8xf32> -> vector<8x8xf32>
    %c1 = arith.constant 1 : index
    %c0_31 = arith.constant 0 : index
    %c0_32 = arith.constant 0 : index
    %49 = vector.load %arg7[%c1, %c0_31, %c0_32] : memref<4x8x1xf32, #tpu.memory_space<vmem>>, vector<1x8x1xf32>
    %50 = vector.shape_cast %49 : vector<1x8x1xf32> to vector<8x1xf32>
    %cst_33 = arith.constant dense<0xFF800000> : vector<8xf32>
    %51 = vector.multi_reduction <maximumf>, %48, %cst_33 [1] : vector<8x8xf32> to vector<8xf32>
    %52 = vector.shape_cast %51 : vector<8xf32> to vector<8x1xf32>
    %53 = arith.maximumf %50, %52 : vector<8x1xf32>
    %54 = arith.subf %50, %53 : vector<8x1xf32>
    %55 = math.exp %54 : vector<8x1xf32>
    %56 = vector.broadcast %53 : vector<8x1xf32> to vector<8x8xf32>
    %57 = arith.subf %48, %56 : vector<8x8xf32>
    %58 = math.exp %57 : vector<8x8xf32>
    %c1_34 = arith.constant 1 : index
    %c0_35 = arith.constant 0 : index
    %c0_36 = arith.constant 0 : index
    %59 = vector.load %arg8[%c1_34, %c0_35, %c0_36] : memref<4x8x1xf32, #tpu.memory_space<vmem>>, vector<1x8x1xf32>
    %60 = vector.shape_cast %59 : vector<1x8x1xf32> to vector<8x1xf32>
    %61 = arith.mulf %55, %60 : vector<8x1xf32>
    %cst_37 = arith.constant dense<0.000000e+00> : vector<8xf32>
    %62 = vector.multi_reduction <add>, %58, %cst_37 [1] : vector<8x8xf32> to vector<8xf32>
    %63 = vector.shape_cast %62 : vector<8xf32> to vector<8x1xf32>
    %64 = arith.addf %61, %63 : vector<8x1xf32>
    %c1_38 = arith.constant 1 : index
    %c0_39 = arith.constant 0 : index
    %c0_40 = arith.constant 0 : index
    %65 = vector.load %arg8[%c1_38, %c0_39, %c0_40] : memref<4x8x1xf32, #tpu.memory_space<vmem>>, vector<1x8x1xf32>
    %66 = vector.shape_cast %65 : vector<1x8x1xf32> to vector<8x1xf32>
    %67 = vector.shape_cast %64 : vector<8x1xf32> to vector<1x8x1xf32>
    tpu.vector_store %arg8[%c1_38, %c0_39, %c0_40], %67 {strides = array<i32>} : memref<4x8x1xf32, #tpu.memory_space<vmem>>, vector<1x8x1xf32>,
    %c1_41 = arith.constant 1 : index
    %c0_42 = arith.constant 0 : index
    %c0_43 = arith.constant 0 : index
    %68 = vector.load %arg9[%c1_41, %c0_42, %c0_43] : memref<4x8x8xf32, #tpu.memory_space<vmem>>, vector<1x8x8xf32>
    %69 = vector.shape_cast %68 : vector<1x8x8xf32> to vector<8x8xf32>
    %70 = vector.broadcast %55 : vector<8x1xf32> to vector<8x8xf32>
    %71 = arith.mulf %70, %69 : vector<8x8xf32>
    %72 = arith.truncf %58 : vector<8x8xf32> to vector<8x8xbf16>
    %cst_44 = arith.constant dense<0.000000e+00> : vector<8x8xf32>
    %73 = tpu.matmul %72, %47, %cst_44 {dimension_numbers = #tpu.dot_dimension_numbers<[1], [0], [0], [1], [0, 0, 1, 1], [], []>} : vector<8x8xbf16>, vector<8x8xbf16>, vector<8x8xf32> -> vector<8x8xf32>
    %74 = arith.addf %71, %73 : vector<8x8xf32>
    %c1_45 = arith.constant 1 : index
    %c0_46 = arith.constant 0 : index
    %c0_47 = arith.constant 0 : index
    %75 = vector.load %arg9[%c1_45, %c0_46, %c0_47] : memref<4x8x8xf32, #tpu.memory_space<vmem>>, vector<1x8x8xf32>
    %76 = vector.shape_cast %75 : vector<1x8x8xf32> to vector<8x8xf32>
    %77 = vector.shape_cast %74 : vector<8x8xf32> to vector<1x8x8xf32>
    tpu.vector_store %arg9[%c1_45, %c0_46, %c0_47], %77 {strides = array<i32>} : memref<4x8x8xf32, #tpu.memory_space<vmem>>, vector<1x8x8xf32>,
    %c1_48 = arith.constant 1 : index
    %c0_49 = arith.constant 0 : index
    %c0_50 = arith.constant 0 : index
    %78 = vector.load %arg7[%c1_48, %c0_49, %c0_50] : memref<4x8x1xf32, #tpu.memory_space<vmem>>, vector<1x8x1xf32>
    %79 = vector.shape_cast %78 : vector<1x8x1xf32> to vector<8x1xf32>
    %80 = vector.shape_cast %53 : vector<8x1xf32> to vector<1x8x1xf32>
    tpu.vector_store %arg7[%c1_48, %c0_49, %c0_50], %80 {strides = array<i32>} : memref<4x8x1xf32, #tpu.memory_space<vmem>>, vector<1x8x1xf32>,
    %81 = vector.extract_strided_slice %4 {offsets = [0, 16], sizes = [8, 8], strides = [1, 1]} : vector<8x32xbf16> to vector<8x8xbf16>
    %82 = vector.extract_strided_slice %6 {offsets = [0, 16], sizes = [8, 8], strides = [1, 1]} : vector<8x32xbf16> to vector<8x8xbf16>
    %83 = vector.extract_strided_slice %8 {offsets = [0, 16], sizes = [8, 8], strides = [1, 1]} : vector<8x32xbf16> to vector<8x8xbf16>
    %cst_51 = arith.constant dense<0.000000e+00> : vector<8x8xf32>
    %84 = tpu.matmul %81, %82, %cst_51 {dimension_numbers = #tpu.dot_dimension_numbers<[1], [1], [0], [0], [0, 0, 1, 0], [], []>} : vector<8x8xbf16>, vector<8x8xbf16>, vector<8x8xf32> -> vector<8x8xf32>
    %c2 = arith.constant 2 : index
    %c0_52 = arith.constant 0 : index
    %c0_53 = arith.constant 0 : index
    %85 = vector.load %arg7[%c2, %c0_52, %c0_53] : memref<4x8x1xf32, #tpu.memory_space<vmem>>, vector<1x8x1xf32>
    %86 = vector.shape_cast %85 : vector<1x8x1xf32> to vector<8x1xf32>
    %cst_54 = arith.constant dense<0xFF800000> : vector<8xf32>
    %87 = vector.multi_reduction <maximumf>, %84, %cst_54 [1] : vector<8x8xf32> to vector<8xf32>
    %88 = vector.shape_cast %87 : vector<8xf32> to vector<8x1xf32>
    %89 = arith.maximumf %86, %88 : vector<8x1xf32>
    %90 = arith.subf %86, %89 : vector<8x1xf32>
    %91 = math.exp %90 : vector<8x1xf32>
    %92 = vector.broadcast %89 : vector<8x1xf32> to vector<8x8xf32>
    %93 = arith.subf %84, %92 : vector<8x8xf32>
    %94 = math.exp %93 : vector<8x8xf32>
    %c2_55 = arith.constant 2 : index
    %c0_56 = arith.constant 0 : index
    %c0_57 = arith.constant 0 : index
    %95 = vector.load %arg8[%c2_55, %c0_56, %c0_57] : memref<4x8x1xf32, #tpu.memory_space<vmem>>, vector<1x8x1xf32>
    %96 = vector.shape_cast %95 : vector<1x8x1xf32> to vector<8x1xf32>
    %97 = arith.mulf %91, %96 : vector<8x1xf32>
    %cst_58 = arith.constant dense<0.000000e+00> : vector<8xf32>
    %98 = vector.multi_reduction <add>, %94, %cst_58 [1] : vector<8x8xf32> to vector<8xf32>
    %99 = vector.shape_cast %98 : vector<8xf32> to vector<8x1xf32>
    %100 = arith.addf %97, %99 : vector<8x1xf32>
    %c2_59 = arith.constant 2 : index
    %c0_60 = arith.constant 0 : index
    %c0_61 = arith.constant 0 : index
    %101 = vector.load %arg8[%c2_59, %c0_60, %c0_61] : memref<4x8x1xf32, #tpu.memory_space<vmem>>, vector<1x8x1xf32>
    %102 = vector.shape_cast %101 : vector<1x8x1xf32> to vector<8x1xf32>
    %103 = vector.shape_cast %100 : vector<8x1xf32> to vector<1x8x1xf32>
    tpu.vector_store %arg8[%c2_59, %c0_60, %c0_61], %103 {strides = array<i32>} : memref<4x8x1xf32, #tpu.memory_space<vmem>>, vector<1x8x1xf32>,
    %c2_62 = arith.constant 2 : index
    %c0_63 = arith.constant 0 : index
    %c0_64 = arith.constant 0 : index
    %104 = vector.load %arg9[%c2_62, %c0_63, %c0_64] : memref<4x8x8xf32, #tpu.memory_space<vmem>>, vector<1x8x8xf32>
    %105 = vector.shape_cast %104 : vector<1x8x8xf32> to vector<8x8xf32>
    %106 = vector.broadcast %91 : vector<8x1xf32> to vector<8x8xf32>
    %107 = arith.mulf %106, %105 : vector<8x8xf32>
    %108 = arith.truncf %94 : vector<8x8xf32> to vector<8x8xbf16>
    %cst_65 = arith.constant dense<0.000000e+00> : vector<8x8xf32>
    %109 = tpu.matmul %108, %83, %cst_65 {dimension_numbers = #tpu.dot_dimension_numbers<[1], [0], [0], [1], [0, 0, 1, 1], [], []>} : vector<8x8xbf16>, vector<8x8xbf16>, vector<8x8xf32> -> vector<8x8xf32>
    %110 = arith.addf %107, %109 : vector<8x8xf32>
    %c2_66 = arith.constant 2 : index
    %c0_67 = arith.constant 0 : index
    %c0_68 = arith.constant 0 : index
    %111 = vector.load %arg9[%c2_66, %c0_67, %c0_68] : memref<4x8x8xf32, #tpu.memory_space<vmem>>, vector<1x8x8xf32>
    %112 = vector.shape_cast %111 : vector<1x8x8xf32> to vector<8x8xf32>
    %113 = vector.shape_cast %110 : vector<8x8xf32> to vector<1x8x8xf32>
    tpu.vector_store %arg9[%c2_66, %c0_67, %c0_68], %113 {strides = array<i32>} : memref<4x8x8xf32, #tpu.memory_space<vmem>>, vector<1x8x8xf32>,
    %c2_69 = arith.constant 2 : index
    %c0_70 = arith.constant 0 : index
    %c0_71 = arith.constant 0 : index
    %114 = vector.load %arg7[%c2_69, %c0_70, %c0_71] : memref<4x8x1xf32, #tpu.memory_space<vmem>>, vector<1x8x1xf32>
    %115 = vector.shape_cast %114 : vector<1x8x1xf32> to vector<8x1xf32>
    %116 = vector.shape_cast %89 : vector<8x1xf32> to vector<1x8x1xf32>
    tpu.vector_store %arg7[%c2_69, %c0_70, %c0_71], %116 {strides = array<i32>} : memref<4x8x1xf32, #tpu.memory_space<vmem>>, vector<1x8x1xf32>,
    %117 = vector.extract_strided_slice %4 {offsets = [0, 24], sizes = [8, 8], strides = [1, 1]} : vector<8x32xbf16> to vector<8x8xbf16>
    %118 = vector.extract_strided_slice %6 {offsets = [0, 24], sizes = [8, 8], strides = [1, 1]} : vector<8x32xbf16> to vector<8x8xbf16>
    %119 = vector.extract_strided_slice %8 {offsets = [0, 24], sizes = [8, 8], strides = [1, 1]} : vector<8x32xbf16> to vector<8x8xbf16>
    %cst_72 = arith.constant dense<0.000000e+00> : vector<8x8xf32>
    %120 = tpu.matmul %117, %118, %cst_72 {dimension_numbers = #tpu.dot_dimension_numbers<[1], [1], [0], [0], [0, 0, 1, 0], [], []>} : vector<8x8xbf16>, vector<8x8xbf16>, vector<8x8xf32> -> vector<8x8xf32>
    %c3 = arith.constant 3 : index
    %c0_73 = arith.constant 0 : index
    %c0_74 = arith.constant 0 : index
    %121 = vector.load %arg7[%c3, %c0_73, %c0_74] : memref<4x8x1xf32, #tpu.memory_space<vmem>>, vector<1x8x1xf32>
    %122 = vector.shape_cast %121 : vector<1x8x1xf32> to vector<8x1xf32>
    %cst_75 = arith.constant dense<0xFF800000> : vector<8xf32>
    %123 = vector.multi_reduction <maximumf>, %120, %cst_75 [1] : vector<8x8xf32> to vector<8xf32>
    %124 = vector.shape_cast %123 : vector<8xf32> to vector<8x1xf32>
    %125 = arith.maximumf %122, %124 : vector<8x1xf32>
    %126 = arith.subf %122, %125 : vector<8x1xf32>
    %127 = math.exp %126 : vector<8x1xf32>
    %128 = vector.broadcast %125 : vector<8x1xf32> to vector<8x8xf32>
    %129 = arith.subf %120, %128 : vector<8x8xf32>
    %130 = math.exp %129 : vector<8x8xf32>
    %c3_76 = arith.constant 3 : index
    %c0_77 = arith.constant 0 : index
    %c0_78 = arith.constant 0 : index
    %131 = vector.load %arg8[%c3_76, %c0_77, %c0_78] : memref<4x8x1xf32, #tpu.memory_space<vmem>>, vector<1x8x1xf32>
    %132 = vector.shape_cast %131 : vector<1x8x1xf32> to vector<8x1xf32>
    %133 = arith.mulf %127, %132 : vector<8x1xf32>
    %cst_79 = arith.constant dense<0.000000e+00> : vector<8xf32>
    %134 = vector.multi_reduction <add>, %130, %cst_79 [1] : vector<8x8xf32> to vector<8xf32>
    %135 = vector.shape_cast %134 : vector<8xf32> to vector<8x1xf32>
    %136 = arith.addf %133, %135 : vector<8x1xf32>
    %c3_80 = arith.constant 3 : index
    %c0_81 = arith.constant 0 : index
    %c0_82 = arith.constant 0 : index
    %137 = vector.load %arg8[%c3_80, %c0_81, %c0_82] : memref<4x8x1xf32, #tpu.memory_space<vmem>>, vector<1x8x1xf32>
    %138 = vector.shape_cast %137 : vector<1x8x1xf32> to vector<8x1xf32>
    %139 = vector.shape_cast %136 : vector<8x1xf32> to vector<1x8x1xf32>
    tpu.vector_store %arg8[%c3_80, %c0_81, %c0_82], %139 {strides = array<i32>} : memref<4x8x1xf32, #tpu.memory_space<vmem>>, vector<1x8x1xf32>,
    %c3_83 = arith.constant 3 : index
    %c0_84 = arith.constant 0 : index
    %c0_85 = arith.constant 0 : index
    %140 = vector.load %arg9[%c3_83, %c0_84, %c0_85] : memref<4x8x8xf32, #tpu.memory_space<vmem>>, vector<1x8x8xf32>
    %141 = vector.shape_cast %140 : vector<1x8x8xf32> to vector<8x8xf32>
    %142 = vector.broadcast %127 : vector<8x1xf32> to vector<8x8xf32>
    %143 = arith.mulf %142, %141 : vector<8x8xf32>
    %144 = arith.truncf %130 : vector<8x8xf32> to vector<8x8xbf16>
    %cst_86 = arith.constant dense<0.000000e+00> : vector<8x8xf32>
    %145 = tpu.matmul %144, %119, %cst_86 {dimension_numbers = #tpu.dot_dimension_numbers<[1], [0], [0], [1], [0, 0, 1, 1], [], []>} : vector<8x8xbf16>, vector<8x8xbf16>, vector<8x8xf32> -> vector<8x8xf32>
    %146 = arith.addf %143, %145 : vector<8x8xf32>
    %c3_87 = arith.constant 3 : index
    %c0_88 = arith.constant 0 : index
    %c0_89 = arith.constant 0 : index
    %147 = vector.load %arg9[%c3_87, %c0_88, %c0_89] : memref<4x8x8xf32, #tpu.memory_space<vmem>>, vector<1x8x8xf32>
    %148 = vector.shape_cast %147 : vector<1x8x8xf32> to vector<8x8xf32>
    %149 = vector.shape_cast %146 : vector<8x8xf32> to vector<1x8x8xf32>
    tpu.vector_store %arg9[%c3_87, %c0_88, %c0_89], %149 {strides = array<i32>} : memref<4x8x8xf32, #tpu.memory_space<vmem>>, vector<1x8x8xf32>,
    %c3_90 = arith.constant 3 : index
    %c0_91 = arith.constant 0 : index
    %c0_92 = arith.constant 0 : index
    %150 = vector.load %arg7[%c3_90, %c0_91, %c0_92] : memref<4x8x1xf32, #tpu.memory_space<vmem>>, vector<1x8x1xf32>
    %151 = vector.shape_cast %150 : vector<1x8x1xf32> to vector<8x1xf32>
    %152 = vector.shape_cast %125 : vector<8x1xf32> to vector<1x8x1xf32>
    tpu.vector_store %arg7[%c3_90, %c0_91, %c0_92], %152 {strides = array<i32>} : memref<4x8x1xf32, #tpu.memory_space<vmem>>, vector<1x8x1xf32>,
    %c0_i32_93 = arith.constant 0 : i32
    %153 = arith.cmpi eq, %arg2, %c0_i32_93 : i32
    %154 = arith.extui %153 : i1 to i32
    %c0_i32_94 = arith.constant 0 : i32
    %155 = arith.cmpi ne, %154, %c0_i32_94 : i32
    scf.if %155 {
      %c0_95 = arith.constant 0 : index
      %c0_96 = arith.constant 0 : index
      %c0_97 = arith.constant 0 : index
      %156 = vector.load %arg9[%c0_95, %c0_96, %c0_97] : memref<4x8x8xf32, #tpu.memory_space<vmem>>, vector<1x8x8xf32>
      %157 = vector.shape_cast %156 : vector<1x8x8xf32> to vector<8x8xf32>
      %c0_98 = arith.constant 0 : index
      %c0_99 = arith.constant 0 : index
      %c0_100 = arith.constant 0 : index
      %158 = vector.load %arg8[%c0_98, %c0_99, %c0_100] : memref<4x8x1xf32, #tpu.memory_space<vmem>>, vector<1x8x1xf32>
      %159 = vector.shape_cast %158 : vector<1x8x1xf32> to vector<8x1xf32>
      %160 = tpu.reciprocal %159 {approx = true} : vector<8x1xf32> -> vector<8x1xf32>
      %161 = vector.broadcast %160 : vector<8x1xf32> to vector<8x8xf32>
      %162 = arith.mulf %157, %161 : vector<8x8xf32>
      %c1_101 = arith.constant 1 : index
      %c0_102 = arith.constant 0 : index
      %c0_103 = arith.constant 0 : index
      %163 = vector.load %arg9[%c1_101, %c0_102, %c0_103] : memref<4x8x8xf32, #tpu.memory_space<vmem>>, vector<1x8x8xf32>
      %164 = vector.shape_cast %163 : vector<1x8x8xf32> to vector<8x8xf32>
      %c1_104 = arith.constant 1 : index
      %c0_105 = arith.constant 0 : index
      %c0_106 = arith.constant 0 : index
      %165 = vector.load %arg8[%c1_104, %c0_105, %c0_106] : memref<4x8x1xf32, #tpu.memory_space<vmem>>, vector<1x8x1xf32>
      %166 = vector.shape_cast %165 : vector<1x8x1xf32> to vector<8x1xf32>
      %167 = tpu.reciprocal %166 {approx = true} : vector<8x1xf32> -> vector<8x1xf32>
      %168 = vector.broadcast %167 : vector<8x1xf32> to vector<8x8xf32>
      %169 = arith.mulf %164, %168 : vector<8x8xf32>
      %170 = tpu.concatenate %162, %169 in 1 : vector<8x8xf32>, vector<8x8xf32> -> vector<8x16xf32>
      %171 = arith.truncf %170 : vector<8x16xf32> to vector<8x16xbf16>
      %c0_107 = arith.constant 0 : index
      %c0_108 = arith.constant 0 : index
      %c0_109 = arith.constant 0 : index
      %172 = vector.load %arg6[%c0_107, %c0_108, %c0_109] : memref<1x8x32xbf16, #tpu.memory_space<vmem>>, vector<1x8x16xbf16>
      %173 = vector.shape_cast %172 : vector<1x8x16xbf16> to vector<8x16xbf16>
      %174 = vector.shape_cast %171 : vector<8x16xbf16> to vector<1x8x16xbf16>
      tpu.vector_store %arg6[%c0_107, %c0_108, %c0_109], %174 {strides = array<i32>} : memref<1x8x32xbf16, #tpu.memory_space<vmem>>, vector<1x8x16xbf16>,
      %c2_110 = arith.constant 2 : index
      %c0_111 = arith.constant 0 : index
      %c0_112 = arith.constant 0 : index
      %175 = vector.load %arg9[%c2_110, %c0_111, %c0_112] : memref<4x8x8xf32, #tpu.memory_space<vmem>>, vector<1x8x8xf32>
      %176 = vector.shape_cast %175 : vector<1x8x8xf32> to vector<8x8xf32>
      %c2_113 = arith.constant 2 : index
      %c0_114 = arith.constant 0 : index
      %c0_115 = arith.constant 0 : index
      %177 = vector.load %arg8[%c2_113, %c0_114, %c0_115] : memref<4x8x1xf32, #tpu.memory_space<vmem>>, vector<1x8x1xf32>
      %178 = vector.shape_cast %177 : vector<1x8x1xf32> to vector<8x1xf32>
      %179 = tpu.reciprocal %178 {approx = true} : vector<8x1xf32> -> vector<8x1xf32>
      %180 = vector.broadcast %179 : vector<8x1xf32> to vector<8x8xf32>
      %181 = arith.mulf %176, %180 : vector<8x8xf32>
      %c3_116 = arith.constant 3 : index
      %c0_117 = arith.constant 0 : index
      %c0_118 = arith.constant 0 : index
      %182 = vector.load %arg9[%c3_116, %c0_117, %c0_118] : memref<4x8x8xf32, #tpu.memory_space<vmem>>, vector<1x8x8xf32>
      %183 = vector.shape_cast %182 : vector<1x8x8xf32> to vector<8x8xf32>
      %c3_119 = arith.constant 3 : index
      %c0_120 = arith.constant 0 : index
      %c0_121 = arith.constant 0 : index
      %184 = vector.load %arg8[%c3_119, %c0_120, %c0_121] : memref<4x8x1xf32, #tpu.memory_space<vmem>>, vector<1x8x1xf32>
      %185 = vector.shape_cast %184 : vector<1x8x1xf32> to vector<8x1xf32>
      %186 = tpu.reciprocal %185 {approx = true} : vector<8x1xf32> -> vector<8x1xf32>
      %187 = vector.broadcast %186 : vector<8x1xf32> to vector<8x8xf32>
      %188 = arith.mulf %183, %187 : vector<8x8xf32>
      %189 = tpu.concatenate %181, %188 in 1 : vector<8x8xf32>, vector<8x8xf32> -> vector<8x16xf32>
      %190 = arith.truncf %189 : vector<8x16xf32> to vector<8x16xbf16>
      %c0_122 = arith.constant 0 : index
      %c0_123 = arith.constant 0 : index
      %c16 = arith.constant 16 : index
      %191 = vector.load %arg6[%c0_122, %c0_123, %c16] : memref<1x8x32xbf16, #tpu.memory_space<vmem>>, vector<1x8x16xbf16>
      %192 = vector.shape_cast %191 : vector<1x8x16xbf16> to vector<8x16xbf16>
      %193 = vector.shape_cast %190 : vector<8x16xbf16> to vector<1x8x16xbf16>
      tpu.vector_store %arg6[%c0_122, %c0_123, %c16], %193 {strides = array<i32>} : memref<1x8x32xbf16, #tpu.memory_space<vmem>>, vector<1x8x16xbf16>,
    } else {
    }
    return
  }
  func.func @transform_0(%arg0: i32, %arg1: i32, %arg2: i32) -> (i32, i32, i32) {
    %c0_i32 = arith.constant 0 : i32
    %c0_i32_0 = arith.constant 0 : i32
    return %arg0, %arg1, %c0_i32 : i32, i32, i32
  }
  func.func @transform_1(%arg0: i32, %arg1: i32, %arg2: i32) -> (i32, i32, i32) {
    %c0_i32 = arith.constant 0 : i32
    %c0_i32_0 = arith.constant 0 : i32
    return %arg0, %arg2, %c0_i32 : i32, i32, i32
  }
  func.func @transform_2(%arg0: i32, %arg1: i32, %arg2: i32) -> (i32, i32, i32) {
    %c0_i32 = arith.constant 0 : i32
    %c0_i32_0 = arith.constant 0 : i32
    return %arg0, %arg2, %c0_i32 : i32, i32, i32
  }
  func.func @transform_3(%arg0: i32, %arg1: i32, %arg2: i32) -> (i32, i32, i32) {
    %c0_i32 = arith.constant 0 : i32
    %c0_i32_0 = arith.constant 0 : i32
    return %arg0, %arg1, %c0_i32 : i32, i32, i32
  }
}

module attributes {stable_mosaic.version = 11 : i64} {
  func.func @_linear_kernel(%arg0: i32, %arg1: i32, %arg2: memref<16x32xbf16, #tpu.memory_space<vmem>>, %arg3: memref<32x64xbf16, #tpu.memory_space<vmem>>, %arg4: memref<1x64xf32, #tpu.memory_space<vmem>>, %arg5: memref<16x64xbf16, #tpu.memory_space<vmem>>) attributes {dimension_semantics = [#tpu.dimension_semantics<parallel>, #tpu.dimension_semantics<parallel>], iteration_bounds = array<i64: 1, 1>, scalar_prefetch = 0 : i64, scratch_operands = 0 : i64, tpu.core_type = #tpu.core_type<tc>, window_params = [{transform_indices = @transform_0, window_bounds = array<i64: 16, 32>}, {transform_indices = @transform_1, window_bounds = array<i64: 32, 64>}, {transform_indices = @transform_2, window_bounds = array<i64: 1, 64>}, {transform_indices = @transform_3, window_bounds = array<i64: 16, 64>}]} {
    %c0 = arith.constant 0 : index
    %c0_0 = arith.constant 0 : index
    %0 = vector.load %arg2[%c0, %c0_0] : memref<16x32xbf16, #tpu.memory_space<vmem>>, vector<16x32xbf16>
    %c0_1 = arith.constant 0 : index
    %c0_2 = arith.constant 0 : index
    %1 = vector.load %arg3[%c0_1, %c0_2] : memref<32x64xbf16, #tpu.memory_space<vmem>>, vector<32x64xbf16>
    %cst = arith.constant dense<0.000000e+00> : vector<16x64xf32>
    %2 = tpu.matmul %0, %1, %cst {dimension_numbers = #tpu.dot_dimension_numbers<[1], [0], [0], [1], [0, 0, 1, 1], [], []>} : vector<16x32xbf16>, vector<32x64xbf16>, vector<16x64xf32> -> vector<16x64xf32>
    %c0_3 = arith.constant 0 : index
    %c0_4 = arith.constant 0 : index
    %3 = vector.load %arg4[%c0_3, %c0_4] : memref<1x64xf32, #tpu.memory_space<vmem>>, vector<1x64xf32>
    %4 = vector.broadcast %3 : vector<1x64xf32> to vector<16x64xf32>
    %5 = arith.addf %2, %4 : vector<16x64xf32>
    %cst_5 = arith.constant 5.000000e-01 : f32
    %6 = vector.broadcast %cst_5 : f32 to vector<16x64xf32>
    %7 = arith.mulf %6, %5 : vector<16x64xf32>
    %cst_6 = arith.constant 0.707106769 : f32
    %8 = vector.broadcast %cst_6 : f32 to vector<16x64xf32>
    %9 = arith.mulf %5, %8 : vector<16x64xf32>
    %10 = math.erf %9 : vector<16x64xf32>
    %cst_7 = arith.constant 1.000000e+00 : f32
    %11 = vector.broadcast %cst_7 : f32 to vector<16x64xf32>
    %12 = arith.addf %11, %10 : vector<16x64xf32>
    %13 = arith.mulf %7, %12 : vector<16x64xf32>
    %14 = arith.truncf %13 : vector<16x64xf32> to vector<16x64xbf16>
    %c0_8 = arith.constant 0 : index
    %c0_9 = arith.constant 0 : index
    %15 = vector.load %arg5[%c0_8, %c0_9] : memref<16x64xbf16, #tpu.memory_space<vmem>>, vector<16x64xbf16>
    tpu.vector_store %arg5[%c0_8, %c0_9], %14 {strides = array<i32>} : memref<16x64xbf16, #tpu.memory_space<vmem>>, vector<16x64xbf16>,
    return
  }
  func.func @transform_0(%arg0: i32, %arg1: i32) -> (i32, i32) {
    %c0_i32 = arith.constant 0 : i32
    %c0_i32_0 = arith.constant 0 : i32
    return %arg0, %c0_i32 : i32, i32
  }
  func.func @transform_1(%arg0: i32, %arg1: i32) -> (i32, i32) {
    %c0_i32 = arith.constant 0 : i32
    %c0_i32_0 = arith.constant 0 : i32
    return %c0_i32, %arg1 : i32, i32
  }
  func.func @transform_2(%arg0: i32, %arg1: i32) -> (i32, i32) {
    %c0_i32 = arith.constant 0 : i32
    %c0_i32_0 = arith.constant 0 : i32
    return %c0_i32, %arg1 : i32, i32
  }
  func.func @transform_3(%arg0: i32, %arg1: i32) -> (i32, i32) {
    %c0_i32 = arith.constant 0 : i32
    return %arg0, %arg1 : i32, i32
  }
}

module attributes {stable_mosaic.version = 11 : i64} {
  func.func @_linear_add_ln_kernel(%arg0: i32, %arg1: memref<16x32xbf16, #tpu.memory_space<vmem>>, %arg2: memref<32x32xbf16, #tpu.memory_space<vmem>>, %arg3: memref<1x32xf32, #tpu.memory_space<vmem>>, %arg4: memref<16x32xbf16, #tpu.memory_space<vmem>>, %arg5: memref<1x32xf32, #tpu.memory_space<vmem>>, %arg6: memref<1x32xf32, #tpu.memory_space<vmem>>, %arg7: memref<16x32xbf16, #tpu.memory_space<vmem>>) attributes {dimension_semantics = [#tpu.dimension_semantics<parallel>], iteration_bounds = array<i64: 1>, scalar_prefetch = 0 : i64, scratch_operands = 0 : i64, tpu.core_type = #tpu.core_type<tc>, window_params = [{transform_indices = @transform_0, window_bounds = array<i64: 16, 32>}, {pipeline_mode = #tpu.pipeline_mode<synchronous>, transform_indices = @transform_1, window_bounds = array<i64: 32, 32>}, {pipeline_mode = #tpu.pipeline_mode<synchronous>, transform_indices = @transform_2, window_bounds = array<i64: 1, 32>}, {transform_indices = @transform_3, window_bounds = array<i64: 16, 32>}, {pipeline_mode = #tpu.pipeline_mode<synchronous>, transform_indices = @transform_4, window_bounds = array<i64: 1, 32>}, {pipeline_mode = #tpu.pipeline_mode<synchronous>, transform_indices = @transform_5, window_bounds = array<i64: 1, 32>}, {transform_indices = @transform_6, window_bounds = array<i64: 16, 32>}]} {
    %c0 = arith.constant 0 : index
    %c0_0 = arith.constant 0 : index
    %0 = vector.load %arg1[%c0, %c0_0] : memref<16x32xbf16, #tpu.memory_space<vmem>>, vector<16x32xbf16>
    %c0_1 = arith.constant 0 : index
    %c0_2 = arith.constant 0 : index
    %1 = vector.load %arg2[%c0_1, %c0_2] : memref<32x32xbf16, #tpu.memory_space<vmem>>, vector<32x32xbf16>
    %cst = arith.constant dense<0.000000e+00> : vector<16x32xf32>
    %2 = tpu.matmul %0, %1, %cst {dimension_numbers = #tpu.dot_dimension_numbers<[1], [0], [0], [1], [0, 0, 1, 1], [], []>} : vector<16x32xbf16>, vector<32x32xbf16>, vector<16x32xf32> -> vector<16x32xf32>
    %c0_3 = arith.constant 0 : index
    %c0_4 = arith.constant 0 : index
    %3 = vector.load %arg3[%c0_3, %c0_4] : memref<1x32xf32, #tpu.memory_space<vmem>>, vector<1x32xf32>
    %4 = vector.broadcast %3 : vector<1x32xf32> to vector<16x32xf32>
    %5 = arith.addf %2, %4 : vector<16x32xf32>
    %c0_5 = arith.constant 0 : index
    %c0_6 = arith.constant 0 : index
    %6 = vector.load %arg4[%c0_5, %c0_6] : memref<16x32xbf16, #tpu.memory_space<vmem>>, vector<16x32xbf16>
    %7 = arith.extf %6 : vector<16x32xbf16> to vector<16x32xf32>
    %8 = arith.addf %5, %7 : vector<16x32xf32>
    %cst_7 = arith.constant dense<0.000000e+00> : vector<16xf32>
    %9 = vector.multi_reduction <add>, %8, %cst_7 [1] : vector<16x32xf32> to vector<16xf32>
    %10 = vector.shape_cast %9 : vector<16xf32> to vector<16x1xf32>
    %cst_8 = arith.constant 3.200000e+01 : f32
    %11 = vector.broadcast %cst_8 : f32 to vector<16x1xf32>
    %12 = arith.divf %10, %11 : vector<16x1xf32>
    %13 = vector.broadcast %12 : vector<16x1xf32> to vector<16x32xf32>
    %14 = arith.subf %8, %13 : vector<16x32xf32>
    %15 = arith.mulf %14, %14 : vector<16x32xf32>
    %cst_9 = arith.constant dense<0.000000e+00> : vector<16xf32>
    %16 = vector.multi_reduction <add>, %15, %cst_9 [1] : vector<16x32xf32> to vector<16xf32>
    %17 = vector.shape_cast %16 : vector<16xf32> to vector<16x1xf32>
    %cst_10 = arith.constant 3.200000e+01 : f32
    %18 = vector.broadcast %cst_10 : f32 to vector<16x1xf32>
    %19 = arith.divf %17, %18 : vector<16x1xf32>
    %cst_11 = arith.constant 9.99999974E-6 : f32
    %20 = vector.broadcast %cst_11 : f32 to vector<16x1xf32>
    %21 = arith.addf %19, %20 : vector<16x1xf32>
    %22 = math.rsqrt %21 : vector<16x1xf32>
    %23 = vector.broadcast %22 : vector<16x1xf32> to vector<16x32xf32>
    %24 = arith.mulf %14, %23 : vector<16x32xf32>
    %c0_12 = arith.constant 0 : index
    %c0_13 = arith.constant 0 : index
    %25 = vector.load %arg5[%c0_12, %c0_13] : memref<1x32xf32, #tpu.memory_space<vmem>>, vector<1x32xf32>
    %26 = vector.broadcast %25 : vector<1x32xf32> to vector<16x32xf32>
    %27 = arith.mulf %24, %26 : vector<16x32xf32>
    %c0_14 = arith.constant 0 : index
    %c0_15 = arith.constant 0 : index
    %28 = vector.load %arg6[%c0_14, %c0_15] : memref<1x32xf32, #tpu.memory_space<vmem>>, vector<1x32xf32>
    %29 = vector.broadcast %28 : vector<1x32xf32> to vector<16x32xf32>
    %30 = arith.addf %27, %29 : vector<16x32xf32>
    %31 = arith.truncf %30 : vector<16x32xf32> to vector<16x32xbf16>
    %c0_16 = arith.constant 0 : index
    %c0_17 = arith.constant 0 : index
    %32 = vector.load %arg7[%c0_16, %c0_17] : memref<16x32xbf16, #tpu.memory_space<vmem>>, vector<16x32xbf16>
    tpu.vector_store %arg7[%c0_16, %c0_17], %31 {strides = array<i32>} : memref<16x32xbf16, #tpu.memory_space<vmem>>, vector<16x32xbf16>,
    return
  }
  func.func @transform_0(%arg0: i32) -> (i32, i32) {
    %c0_i32 = arith.constant 0 : i32
    %c0_i32_0 = arith.constant 0 : i32
    return %arg0, %c0_i32 : i32, i32
  }
  func.func @transform_1(%arg0: i32) -> (i32, i32) {
    %c0_i32 = arith.constant 0 : i32
    %c0_i32_0 = arith.constant 0 : i32
    %c0_i32_1 = arith.constant 0 : i32
    return %c0_i32, %c0_i32_0 : i32, i32
  }
  func.func @transform_2(%arg0: i32) -> (i32, i32) {
    %c0_i32 = arith.constant 0 : i32
    %c0_i32_0 = arith.constant 0 : i32
    %c0_i32_1 = arith.constant 0 : i32
    return %c0_i32, %c0_i32_0 : i32, i32
  }
  func.func @transform_3(%arg0: i32) -> (i32, i32) {
    %c0_i32 = arith.constant 0 : i32
    %c0_i32_0 = arith.constant 0 : i32
    return %arg0, %c0_i32 : i32, i32
  }
  func.func @transform_4(%arg0: i32) -> (i32, i32) {
    %c0_i32 = arith.constant 0 : i32
    %c0_i32_0 = arith.constant 0 : i32
    %c0_i32_1 = arith.constant 0 : i32
    return %c0_i32, %c0_i32_0 : i32, i32
  }
  func.func @transform_5(%arg0: i32) -> (i32, i32) {
    %c0_i32 = arith.constant 0 : i32
    %c0_i32_0 = arith.constant 0 : i32
    %c0_i32_1 = arith.constant 0 : i32
    return %c0_i32, %c0_i32_0 : i32, i32
  }
  func.func @transform_6(%arg0: i32) -> (i32, i32) {
    %c0_i32 = arith.constant 0 : i32
    %c0_i32_0 = arith.constant 0 : i32
    return %arg0, %c0_i32 : i32, i32
  }
}

module attributes {stable_mosaic.version = 11 : i64} {
  func.func @_linear_add_ln_kernel(%arg0: i32, %arg1: memref<16x64xbf16, #tpu.memory_space<vmem>>, %arg2: memref<64x32xbf16, #tpu.memory_space<vmem>>, %arg3: memref<1x32xf32, #tpu.memory_space<vmem>>, %arg4: memref<16x32xbf16, #tpu.memory_space<vmem>>, %arg5: memref<1x32xf32, #tpu.memory_space<vmem>>, %arg6: memref<1x32xf32, #tpu.memory_space<vmem>>, %arg7: memref<16x32xbf16, #tpu.memory_space<vmem>>) attributes {dimension_semantics = [#tpu.dimension_semantics<parallel>], iteration_bounds = array<i64: 1>, scalar_prefetch = 0 : i64, scratch_operands = 0 : i64, tpu.core_type = #tpu.core_type<tc>, window_params = [{transform_indices = @transform_0, window_bounds = array<i64: 16, 64>}, {pipeline_mode = #tpu.pipeline_mode<synchronous>, transform_indices = @transform_1, window_bounds = array<i64: 64, 32>}, {pipeline_mode = #tpu.pipeline_mode<synchronous>, transform_indices = @transform_2, window_bounds = array<i64: 1, 32>}, {transform_indices = @transform_3, window_bounds = array<i64: 16, 32>}, {pipeline_mode = #tpu.pipeline_mode<synchronous>, transform_indices = @transform_4, window_bounds = array<i64: 1, 32>}, {pipeline_mode = #tpu.pipeline_mode<synchronous>, transform_indices = @transform_5, window_bounds = array<i64: 1, 32>}, {transform_indices = @transform_6, window_bounds = array<i64: 16, 32>}]} {
    %c0 = arith.constant 0 : index
    %c0_0 = arith.constant 0 : index
    %0 = vector.load %arg1[%c0, %c0_0] : memref<16x64xbf16, #tpu.memory_space<vmem>>, vector<16x64xbf16>
    %c0_1 = arith.constant 0 : index
    %c0_2 = arith.constant 0 : index
    %1 = vector.load %arg2[%c0_1, %c0_2] : memref<64x32xbf16, #tpu.memory_space<vmem>>, vector<64x32xbf16>
    %cst = arith.constant dense<0.000000e+00> : vector<16x32xf32>
    %2 = tpu.matmul %0, %1, %cst {dimension_numbers = #tpu.dot_dimension_numbers<[1], [0], [0], [1], [0, 0, 1, 1], [], []>} : vector<16x64xbf16>, vector<64x32xbf16>, vector<16x32xf32> -> vector<16x32xf32>
    %c0_3 = arith.constant 0 : index
    %c0_4 = arith.constant 0 : index
    %3 = vector.load %arg3[%c0_3, %c0_4] : memref<1x32xf32, #tpu.memory_space<vmem>>, vector<1x32xf32>
    %4 = vector.broadcast %3 : vector<1x32xf32> to vector<16x32xf32>
    %5 = arith.addf %2, %4 : vector<16x32xf32>
    %c0_5 = arith.constant 0 : index
    %c0_6 = arith.constant 0 : index
    %6 = vector.load %arg4[%c0_5, %c0_6] : memref<16x32xbf16, #tpu.memory_space<vmem>>, vector<16x32xbf16>
    %7 = arith.extf %6 : vector<16x32xbf16> to vector<16x32xf32>
    %8 = arith.addf %5, %7 : vector<16x32xf32>
    %cst_7 = arith.constant dense<0.000000e+00> : vector<16xf32>
    %9 = vector.multi_reduction <add>, %8, %cst_7 [1] : vector<16x32xf32> to vector<16xf32>
    %10 = vector.shape_cast %9 : vector<16xf32> to vector<16x1xf32>
    %cst_8 = arith.constant 3.200000e+01 : f32
    %11 = vector.broadcast %cst_8 : f32 to vector<16x1xf32>
    %12 = arith.divf %10, %11 : vector<16x1xf32>
    %13 = vector.broadcast %12 : vector<16x1xf32> to vector<16x32xf32>
    %14 = arith.subf %8, %13 : vector<16x32xf32>
    %15 = arith.mulf %14, %14 : vector<16x32xf32>
    %cst_9 = arith.constant dense<0.000000e+00> : vector<16xf32>
    %16 = vector.multi_reduction <add>, %15, %cst_9 [1] : vector<16x32xf32> to vector<16xf32>
    %17 = vector.shape_cast %16 : vector<16xf32> to vector<16x1xf32>
    %cst_10 = arith.constant 3.200000e+01 : f32
    %18 = vector.broadcast %cst_10 : f32 to vector<16x1xf32>
    %19 = arith.divf %17, %18 : vector<16x1xf32>
    %cst_11 = arith.constant 9.99999974E-6 : f32
    %20 = vector.broadcast %cst_11 : f32 to vector<16x1xf32>
    %21 = arith.addf %19, %20 : vector<16x1xf32>
    %22 = math.rsqrt %21 : vector<16x1xf32>
    %23 = vector.broadcast %22 : vector<16x1xf32> to vector<16x32xf32>
    %24 = arith.mulf %14, %23 : vector<16x32xf32>
    %c0_12 = arith.constant 0 : index
    %c0_13 = arith.constant 0 : index
    %25 = vector.load %arg5[%c0_12, %c0_13] : memref<1x32xf32, #tpu.memory_space<vmem>>, vector<1x32xf32>
    %26 = vector.broadcast %25 : vector<1x32xf32> to vector<16x32xf32>
    %27 = arith.mulf %24, %26 : vector<16x32xf32>
    %c0_14 = arith.constant 0 : index
    %c0_15 = arith.constant 0 : index
    %28 = vector.load %arg6[%c0_14, %c0_15] : memref<1x32xf32, #tpu.memory_space<vmem>>, vector<1x32xf32>
    %29 = vector.broadcast %28 : vector<1x32xf32> to vector<16x32xf32>
    %30 = arith.addf %27, %29 : vector<16x32xf32>
    %31 = arith.truncf %30 : vector<16x32xf32> to vector<16x32xbf16>
    %c0_16 = arith.constant 0 : index
    %c0_17 = arith.constant 0 : index
    %32 = vector.load %arg7[%c0_16, %c0_17] : memref<16x32xbf16, #tpu.memory_space<vmem>>, vector<16x32xbf16>
    tpu.vector_store %arg7[%c0_16, %c0_17], %31 {strides = array<i32>} : memref<16x32xbf16, #tpu.memory_space<vmem>>, vector<16x32xbf16>,
    return
  }
  func.func @transform_0(%arg0: i32) -> (i32, i32) {
    %c0_i32 = arith.constant 0 : i32
    %c0_i32_0 = arith.constant 0 : i32
    return %arg0, %c0_i32 : i32, i32
  }
  func.func @transform_1(%arg0: i32) -> (i32, i32) {
    %c0_i32 = arith.constant 0 : i32
    %c0_i32_0 = arith.constant 0 : i32
    %c0_i32_1 = arith.constant 0 : i32
    return %c0_i32, %c0_i32_0 : i32, i32
  }
  func.func @transform_2(%arg0: i32) -> (i32, i32) {
    %c0_i32 = arith.constant 0 : i32
    %c0_i32_0 = arith.constant 0 : i32
    %c0_i32_1 = arith.constant 0 : i32
    return %c0_i32, %c0_i32_0 : i32, i32
  }
  func.func @transform_3(%arg0: i32) -> (i32, i32) {
    %c0_i32 = arith.constant 0 : i32
    %c0_i32_0 = arith.constant 0 : i32
    return %arg0, %c0_i32 : i32, i32
  }
  func.func @transform_4(%arg0: i32) -> (i32, i32) {
    %c0_i32 = arith.constant 0 : i32
    %c0_i32_0 = arith.constant 0 : i32
    %c0_i32_1 = arith.constant 0 : i32
    return %c0_i32, %c0_i32_0 : i32, i32
  }
  func.func @transform_5(%arg0: i32) -> (i32, i32) {
    %c0_i32 = arith.constant 0 : i32
    %c0_i32_0 = arith.constant 0 : i32
    %c0_i32_1 = arith.constant 0 : i32
    return %c0_i32, %c0_i32_0 : i32, i32
  }
  func.func @transform_6(%arg0: i32) -> (i32, i32) {
    %c0_i32 = arith.constant 0 : i32
    %c0_i32_0 = arith.constant 0 : i32
    return %arg0, %c0_i32 : i32, i32
  }
}

</mosaic_0001>

<bundles_post_ra>
// kernel: transformer_encoder.10
= control target key start
LH: loop header
LB: loop body
LE: loop exit
PB: predicated region body
PF: predicated region fallthrough
CT: control target
= control target key end

     0   :  { %v171_v0 = vmov 0.0   ;;  %vm172_vm0 = vmmov 0   ;;  %vm48_vm1 = vcmask 261120   ;;  %vm103_vm2 = vcmask 257024   ;;  %s241_s1 = inlined_call_operand.vmem [shape: bf16[32,96], index: 1, kind: input, shape index: {}]   ;;  %s242_s0 = inlined_call_operand.vmem [shape: bf16[16,32], index: 0, kind: input, shape index: {}]   ;;  %s243_s2 = inlined_call_operand.vmem [shape: f32[1,96], index: 2, kind: input, shape index: {}]   ;;  %s244_s3 = inlined_call_operand.vmem [shape: bf16[16,32], index: 3, kind: output, shape index: {0}]   ;;  %s245_s5 = inlined_call_operand.vmem [shape: bf16[16,32], index: 5, kind: output, shape index: {2}]   ;;  %s246_s4 = inlined_call_operand.vmem [shape: bf16[16,32], index: 4, kind: output, shape index: {1}]  }
   0x1   :  { %156 = vmatprep.subr.bf16.mxu0 %v171_v0  ;;  %v168_v1 = vld [vmem:[%s241_s1] sm:$0xff]   ;;  %160 = vmatprep.mubr.msk.bf16.mxu0 %vm172_vm0, %v171_v0  ;;  %v169_v2 = vld [vmem:[%s241_s1 + $0x8] sm:$0xff]   ;;  %s173_s1 = smov 64  }
   0x2   :  { %157 = vmatpush3.bf16.msra.mxu0 %v168_v1  ;;  %v170_v3 = vld [vmem:[%s242_s0] sm:$0xff]   ;;  %s174_s0 = smov 96  }
   0x3   :  { %158 = vmatprep.subr.bf16.mxu0 %v171_v0  ;;  %v140_v4 = vld [vmem:[%s243_s2] ss:$0 sm:$0xff] }
   0x6   :  { %159 = vmatpush3.bf16.msra.mxu0 %v169_v2 }
   0x9   :  { %161 = vmatmul.mubr.msk.bf16.vlgmr.msra.gmra.mrb[0].mxu0 %vm48_vm1, %v170_v3 }
  0xdc   :  { %v86_v5 = vpop.f32.mrb[0].mxu0 }
  0xdd   :  { %v87_v6 = vadd.f32 %v140_v4, %v86_v5  ;;  %v162_v7 = vpop.f32.mrb[1].mxu0 }
  0xde   :  { %v89_v8 = vpop.f32.mrb[2].mxu0 }
  0xdf   :  { %v93_v9 = vmul.f32 0.35355338, %v87_v6  ;;  %v90_v10 = vadd.f32 %v140_v4, %v89_v8  ;;  %v163_v11 = vpop.f32.mrb[3].mxu0  ;;  %v151_v12 = vpack.c.bf16 %v87_v6, %v87_v6 }
  0xe1   :  { %v149_v13 = vpack.c.bf16 %v93_v9, %v93_v9  ;;  %v94_v14 = vmul.f32 0.35355338, %v90_v10  ;;  %120 = vrot.lane.b32.xlu1 %v151_v12, %s173_s1  ;;  %112 = vrot.lane.b32.xlu0 %v151_v12, %s174_s0  ;;  %v152_v16 = vpack.c.bf16 %v90_v10, %v90_v10 }
  0xe3   :  { %104 = vst.msk [vmem:[%s244_s3] sm:$0xf] %vm103_vm2, %v149_v13  ;;  %v150_v15 = vpack.c.bf16 %v94_v14, %v94_v14 }
  0xe5   :  { %105 = vst.msk [vmem:[%s244_s3 + $0x4] sm:$0xf] %vm103_vm2, %v150_v15  ;;  %122 = vrot.lane.b32.xlu1 %v152_v16, %s173_s1  ;;  %114 = vrot.lane.b32.xlu0 %v152_v16, %s174_s0 }
 0x153   :  { %v121_v17 = vpop.permute.xlu1 %120  ;;  %v113_v18 = vpop.permute.xlu0 %112 }
 0x154   :  { %126 = vst.msk [vmem:[%s245_s5] sm:$0xf] %vm103_vm2, %v121_v17  ;;  %118 = vst.msk [vmem:[%s246_s4] sm:$0xf] %vm103_vm2, %v113_v18 }
 0x157   :  { %v123_v19 = vpop.permute.xlu1 %122  ;;  %v115_v20 = vpop.permute.xlu0 %114 }
 0x158   :  { %127 = vst.msk [vmem:[%s245_s5 + $0x4] sm:$0xf] %vm103_vm2, %v123_v19  ;;  %119 = vst.msk [vmem:[%s246_s4 + $0x4] sm:$0xf] %vm103_vm2, %v115_v20 }

// kernel: transformer_encoder.13
= control target key start
LH: loop header
LB: loop body
LE: loop exit
PB: predicated region body
PF: predicated region fallthrough
CT: control target
= control target key end

     0   :  { %v144_v0 = vmov 0.0   ;;  %vm145_vm0 = vmmov 0   ;;  %vm45_vm1 = vcmask 261120   ;;  %vm108_vm2 = vcmask 519168   ;;  %s184_s1 = inlined_call_operand.vmem [shape: bf16[32,64], index: 1, kind: input, shape index: {}]   ;;  %s185_s0 = inlined_call_operand.vmem [shape: bf16[16,32], index: 0, kind: input, shape index: {}]   ;;  %s186_s2 = inlined_call_operand.vmem [shape: f32[1,64], index: 2, kind: input, shape index: {}]   ;;  %s187_s3 = inlined_call_operand.vmem [shape: bf16[16,64], index: 3, kind: output, shape index: {}]  }
   0x1   :  { %127 = vmatprep.subr.bf16.mxu0 %v144_v0  ;;  %v137_v1 = vld [vmem:[%s184_s1] sm:$0xff]   ;;  %131 = vmatprep.mubr.msk.bf16.mxu0 %vm145_vm0, %v144_v0  ;;  %v138_v2 = vld [vmem:[%s184_s1 + $0x8] sm:$0xff]  }
   0x2   :  { %128 = vmatpush3.bf16.msra.mxu0 %v137_v1  ;;  %v139_v3 = vld [vmem:[%s185_s0] sm:$0xff]  }
   0x3   :  { %129 = vmatprep.subr.bf16.mxu0 %v144_v0  ;;  %v115_v4 = vld [vmem:[%s186_s2] ss:$0 sm:$0xff] }
   0x6   :  { %130 = vmatpush3.bf16.msra.mxu0 %v138_v2 }
   0x9   :  { %132 = vmatmul.mubr.msk.bf16.vlgmr.msra.gmra.mrb[0].mxu0 %vm45_vm1, %v139_v3 }
  0xdc   :  { %v83_v5 = vpop.f32.mrb[0].mxu0 }
  0xdd   :  { %v84_v6 = vadd.f32 %v115_v4, %v83_v5  ;;  %v133_v7 = vpop.f32.mrb[1].mxu0 }
  0xde   :  { %v86_v8 = vpop.f32.mrb[2].mxu0 }
  0xdf   :  { %v92_v9 = vmul.f32 0.70710677, %v84_v6  ;;  %v87_v10 = vadd.f32 %v115_v4, %v86_v8  ;;  %v134_v11 = vpop.f32.mrb[3].mxu0  ;;  %v90_v14 = vmul.f32 0.5, %v84_v6 }
  0xe1   :  { %140 = verf.f32 %v92_v9  ;;  %v93_v12 = vmul.f32 0.70710677, %v87_v10  ;;  %v91_v18 = vmul.f32 0.5, %v87_v10 }
  0xe3   :  { %142 = verf.f32 %v93_v12 }
  0xeb   :  { %v141_v13 = vpop.eup %140 }
  0xec   :  { %v96_v15 = vadd.f32 1.0, %v141_v13 }
  0xed   :  { %v143_v16 = vpop.eup %142 }
  0xee   :  { %v98_v17 = vmul.f32 %v96_v15, %v90_v14  ;;  %v97_v19 = vadd.f32 1.0, %v143_v16 }
  0xf0   :  { %v122_v20 = vpack.c.bf16 %v98_v17, %v98_v17  ;;  %v99_v21 = vmul.f32 %v97_v19, %v91_v18 }
  0xf2   :  { %109 = vst.msk [vmem:[%s187_s3] sm:$0xf] %vm108_vm2, %v122_v20  ;;  %v123_v22 = vpack.c.bf16 %v99_v21, %v99_v21 }
  0xf4   :  { %110 = vst.msk [vmem:[%s187_s3 + $0x4] sm:$0xf] %vm108_vm2, %v123_v22 }

// kernel: transformer_encoder.12
= control target key start
LH: loop header
LB: loop body
LE: loop exit
PB: predicated region body
PF: predicated region fallthrough
CT: control target
= control target key end

     0   :  { %v200_v0 = vmov 0.0   ;;  %vm201_vm0 = vmmov 0   ;;  %vm54_vm1 = vcmask 261120   ;;  %vm158_vm2 = vcmask 257024   ;;  %s269_s1 = inlined_call_operand.vmem [shape: bf16[32,32], index: 1, kind: input, shape index: {}]   ;;  %s270_s0 = inlined_call_operand.vmem [shape: bf16[16,32], index: 0, kind: input, shape index: {}]   ;;  %s271_s3 = inlined_call_operand.vmem [shape: bf16[16,32], index: 3, kind: input, shape index: {}]   ;;  %s272_s2 = inlined_call_operand.vmem [shape: f32[1,32], index: 2, kind: input, shape index: {}]   ;;  %s273_s4 = inlined_call_operand.vmem [shape: f32[1,32], index: 4, kind: input, shape index: {}]   ;;  %s274_s5 = inlined_call_operand.vmem [shape: f32[1,32], index: 5, kind: input, shape index: {}]   ;;  %s275_s6 = inlined_call_operand.vmem [shape: bf16[16,32], index: 6, kind: output, shape index: {}]  }
   0x1   :  { %183 = vmatprep.subr.bf16.mxu0 %v200_v0  ;;  %v193_v1 = vld [vmem:[%s269_s1] sm:$0xff]   ;;  %187 = vmatprep.mubr.msk.bf16.mxu0 %vm201_vm0, %v200_v0  ;;  %v194_v2 = vld [vmem:[%s269_s1 + $0x8] sm:$0xff]  }
   0x2   :  { %184 = vmatpush3.bf16.msra.mxu0 %v193_v1  ;;  %v195_v3 = vld [vmem:[%s270_s0] sm:$0xff]  }
   0x3   :  { %185 = vmatprep.subr.bf16.mxu0 %v200_v0  ;;  %v177_v4 = vld [vmem:[%s271_s3] sm:$0xff]  }
   0x4   :  { %v165_v5 = vld [vmem:[%s272_s2] ss:$0 sm:$0xff]  ;;  %v178_v6 = vunpack.c.l.bf16 %v177_v4  ;;  %v179_v10 = vunpack.c.h.bf16 %v177_v4 }
   0x5   :  { %v170_v35 = vld [vmem:[%s273_s4] ss:$0 sm:$0xff] }
   0x6   :  { %186 = vmatpush3.bf16.msra.mxu0 %v194_v2  ;;  %v171_v37 = vld [vmem:[%s274_s5] ss:$0 sm:$0xff] }
   0x9   :  { %188 = vmatmul.mubr.msk.bf16.vlgmr.msra.gmra.mrb[0].mxu0 %vm54_vm1, %v195_v3 }
  0xdc   :  { %v92_v7 = vpop.f32.mrb[0].mxu0 }
  0xdd   :  { %v93_v8 = vadd.f32 %v165_v5, %v92_v7  ;;  %v189_v9 = vpop.f32.mrb[1].mxu0 }
  0xde   :  { %v95_v11 = vpop.f32.mrb[2].mxu0 }
  0xdf   :  { %v96_v12 = vadd.f32 %v165_v5, %v95_v11  ;;  %v190_v13 = vpop.f32.mrb[3].mxu0  ;;  %v103_v14 = vadd.f32 %v178_v6, %v93_v8 }
  0xe1   :  { %v105_v15 = vsel %vm54_vm1, %v103_v14, 0.0  ;;  %v104_v16 = vadd.f32 %v179_v10, %v96_v12 }
  0xe2   :  { %106 = vadd.xlane.f32.xlu0 %v105_v15 }
  0xe3   :  { %v108_v17 = vsel %vm54_vm1, %v104_v16, 0.0 }
  0xe6   :  { %109 = vadd.xlane.f32.xlu0 %v108_v17 }
 0x16f   :  { %v107_v18 = vpop.xlane.xlu0 %106 }
 0x170   :  { %v112_v19 = vmul.f32 0.03125, %v107_v18 }
 0x172   :  { %v114_v20 = vsub.f32 %v103_v14, %v112_v19 }
 0x173   :  { %v110_v21 = vpop.xlane.xlu0 %109 }
 0x174   :  { %v113_v22 = vmul.f32 0.03125, %v110_v21  ;;  %v116_v23 = vmul.f32 %v114_v20, %v114_v20 }
 0x176   :  { %v115_v24 = vsub.f32 %v104_v16, %v113_v22  ;;  %v118_v25 = vsel %vm54_vm1, %v116_v23, 0.0 }
 0x177   :  { %119 = vadd.xlane.f32.xlu1 %v118_v25 }
 0x178   :  { %v117_v26 = vmul.f32 %v115_v24, %v115_v24 }
 0x17a   :  { %v121_v27 = vsel %vm54_vm1, %v117_v26, 0.0 }
 0x17b   :  { %122 = vadd.xlane.f32.xlu1 %v121_v27 }
 0x204   :  { %v120_v28 = vpop.xlane.xlu1 %119 }
 0x205   :  { %v124_v29 = vmul.f32 0.03125, %v120_v28 }
 0x207   :  { %v126_v30 = vadd.f32 1e-05, %v124_v29 }
 0x208   :  { %v123_v31 = vpop.xlane.xlu1 %122 }
 0x209   :  { %196 = vrsqrt.f32 %v126_v30  ;;  %v125_v32 = vmul.f32 0.03125, %v123_v31 }
 0x20b   :  { %v127_v33 = vadd.f32 1e-05, %v125_v32 }
 0x20d   :  { %198 = vrsqrt.f32 %v127_v33 }
 0x213   :  { %v197_v34 = vpop.eup %196 }
 0x214   :  { %v130_v36 = vmul.f32 %v197_v34, %v114_v20 }
 0x216   :  { %v139_v38 = vmul.f32 %v170_v35, %v130_v36 }
 0x217   :  { %v199_v39 = vpop.eup %198 }
 0x218   :  { %v148_v40 = vadd.f32 %v171_v37, %v139_v38  ;;  %v131_v41 = vmul.f32 %v199_v39, %v115_v24 }
 0x21a   :  { %v174_v42 = vpack.c.bf16 %v148_v40, %v148_v40  ;;  %v140_v43 = vmul.f32 %v170_v35, %v131_v41 }
 0x21c   :  { %159 = vst.msk [vmem:[%s275_s6] sm:$0xf] %vm158_vm2, %v174_v42  ;;  %v149_v44 = vadd.f32 %v171_v37, %v140_v43 }
 0x21e   :  { %v175_v45 = vpack.c.bf16 %v149_v44, %v149_v44 }
 0x220   :  { %160 = vst.msk [vmem:[%s275_s6 + $0x4] sm:$0xf] %vm158_vm2, %v175_v45 }

// kernel: transformer_encoder.11
= control target key start
LH: loop header
LB: loop body
LE: loop exit
PB: predicated region body
PF: predicated region fallthrough
CT: control target
= control target key end

     0   :  { %s1200_s12 = smov 0   ;;  %s1202_s13 = smov 0   ;;  %s1382_s0 = inlined_call_operand.vmem [shape: bf16[2,8,32], index: 0, kind: input, shape index: {}]   ;;  %s1383_s1 = inlined_call_operand.vmem [shape: bf16[2,8,32], index: 1, kind: input, shape index: {}]   ;;  %s1384_s2 = inlined_call_operand.vmem [shape: bf16[2,8,32], index: 2, kind: input, shape index: {}]   ;;  %s1385_s3 = inlined_call_operand.vmem [shape: bf16[2,8,32], index: 3, kind: output, shape index: {}]  }
   0x1   :  { %s1204_s14 = smov 0  }
   0x2 LB: > { %s32_s15 = sadd.s32 1, %s1165_s13  ;;  %p997_p0 = scmp.ge.s32.totalorder %s1169_s14, 1  ;;  %s1169_s14 = sphi %s1204_s14, %s13_s14   ;;  %s1165_s13 = sphi %s1202_s13, %s1387_s13   ;;  %s1161_s12 = sphi %s1200_s12, %s1386_s12  }
   0x3   : > { %p34_p1 = scmp.ge.s32.totalorder %s32_s15, 2  ;;  %p190_p2 = scmp.lt.s32.totalorder %s1169_s14, 3 }
   0x5   : > { %s1389_s15 = smov (%p34_p1, %s32_s15), 0  ;;  %p191_p3 = pnand %p997_p0, %p190_p2 }
   0x6   : > { %p232_p4 = scmp.lt.s32.totalorder (!%p191_p3), %s1161_s12, 1  ;;  %vm274_vm0 = vcmask (!%p191_p3), 64512   ;;  %v1171_v0 = vmov (!%p191_p3), 0.0   ;;  %vm1172_vm1 = vmmov (!%p191_p3), 0   ;;  %vm265_vm2 = vcmask (!%p191_p3), 7168   ;;  %s1175_s23 = smov (!%p191_p3), 120  }
   0x7   : > { %194 = sbr.rel (%p191_p3) target bundleno = 1584 (0x630), region = 32  ;;  %1033 = vmatprep.subr.bf16.mxu0 (!%p191_p3), %v1171_v0  ;;  %275 = vst.msk [vmem:[#allocation4] sm:$0xff] (!%p191_p3), %vm274_vm0, %v1171_v0  ;;  %276 = vst.msk [vmem:[#allocation4 + $0x8] sm:$0xff] (!%p191_p3), %vm274_vm0, %v1171_v0  ;;  %1035 = vmatprep.mubr.msk.bf16.mxu0 (!%p191_p3), %vm1172_vm1, %v1171_v0  ;;  %v1173_v4 = vmov (!%p191_p3), -inf   ;;  %v1174_v10 = vmov (!%p191_p3), 0   ;;  %s1176_s24 = smov (!%p191_p3), 112  }
   0x8   : > { %277 = vst.msk [vmem:[#allocation4 + $0x10] sm:$0xff] (!%p191_p3), %vm274_vm0, %v1171_v0  ;;  %278 = vst.msk [vmem:[#allocation4 + $0x18] sm:$0xff] (!%p191_p3), %vm274_vm0, %v1171_v0  ;;  %1039 = vmatprep.subr.bf16.mxu1 (!%p191_p3), %v1171_v0  ;;  %1041 = vmatprep.mubr.msk.bf16.mxu1 (!%p191_p3), %vm1172_vm1, %v1171_v0  ;;  %s1177_s25 = smov (!%p191_p3), 104   ;;  %vm364_vm3 = vcmask (!%p191_p3), 1043456   ;;  %s1178_s29 = smov (!%p191_p3), 8   ;;  %vm852_vm4 = vcmask (!%p191_p3), 125952  }
   0x9   : > { %266 = vst.msk [vmem:[#allocation2] sm:$0xff] (!%p191_p3), %vm265_vm2, %v1173_v4  ;;  %267 = vst.msk [vmem:[#allocation2 + $0x8] sm:$0xff] (!%p191_p3), %vm265_vm2, %v1173_v4  ;;  %1114 = vset.pattern.permute.xlu0 (!%p191_p3), %v1174_v10  ;;  %1115 = vset.pattern.permute.xlu1 (!%p191_p3), %v1174_v10  ;;  %s1179_s6 = smov (!%p191_p3), 16   ;;  %vm884_vm5 = vcmask (!%p191_p3), 257152  }
   0xa   : > { %268 = vst.msk [vmem:[#allocation2 + $0x10] sm:$0xff] (!%p191_p3), %vm265_vm2, %v1173_v4  ;;  %269 = vst.msk [vmem:[#allocation2 + $0x18] sm:$0xff] (!%p191_p3), %vm265_vm2, %v1173_v4 }
   0xb   : > { %270 = vst.msk [vmem:[#allocation3] sm:$0xff] (!%p191_p3), %vm265_vm2, %v1171_v0  ;;  %271 = vst.msk [vmem:[#allocation3 + $0x8] sm:$0xff] (!%p191_p3), %vm265_vm2, %v1171_v0 }
   0xc   : > { %272 = vst.msk [vmem:[#allocation3 + $0x10] sm:$0xff] (!%p191_p3), %vm265_vm2, %v1171_v0  ;;  %273 = vst.msk [vmem:[#allocation3 + $0x18] sm:$0xff] (!%p191_p3), %vm265_vm2, %v1171_v0 }
   0xe   : > { %s1391_s12 = smov (!%p232_p4, %s1161_s12), 1 }
   0xf   : > { %s1232_s16 = sshll.u32 %s1391_s12, 2 }
  0x10   : > { %s245_s19 = scalar_lea.vmem %s1383_s1, %s1232_s16  ;;  %s238_s22 = scalar_lea.vmem %s1382_s0, %s1232_s16  ;;  %v1266_v13 = vld [vmem:[#allocation2] sm:$0xff]  ;;  %v1309_v52 = vld [vmem:[#allocation2 + $0x8] sm:$0xff] }
  0x11   : > { %v280_v1 = vld [vmem:[%s245_s19] sm:$0xf]  ;;  %s252_s28 = scalar_lea.vmem %s1384_s2, %s1232_s16  ;;  %v1319_v56 = vld [vmem:[#allocation2 + $0x10] sm:$0xff]  ;;  %v741_v60 = vld [vmem:[#allocation2 + $0x18] sm:$0xff]  ;;  %s259_s5 = scalar_lea.vmem %s1385_s3, %s1232_s16 }
  0x12   : > { %v287_v2 = vsel %vm274_vm0, %v280_v1, 0  ;;  %v279_v3 = vld [vmem:[%s238_s22] sm:$0xf]  ;;  %v1005_v11 = vcombine.low %v280_v1, %v280_v1 }
  0x13   : > { %1034 = vmatpush3.bf16.xpose.msra.mxu0 %v287_v2  ;;  %v1004_v12 = vcombine.low %v279_v3, %v279_v3  ;;  %v1280_v17 = vld [vmem:[%s252_s28] sm:$0xf] }
  0x14   : > { %1051 = vmatprep.subr.bf16.mxu0 %v1171_v0  ;;  %419 = vrot.lane.b32.xlu1 %v1005_v11, %s1175_s23  ;;  %v366_v18 = vsel %vm364_vm3, %v1280_v17, 0  ;;  %v1007_v63 = vcombine.low %v1280_v17, %v1280_v17 }
  0x15   : > { %1040 = vmatpush3.bf16.msra.mxu1 %v366_v18 }
  0x16   : > { %1045 = vmatprep.subr.bf16.mxu1 %v1171_v0 }
  0x18   : > { %414 = vrot.lane.b32.xlu1 %v1004_v12, %s1175_s23 }
  0x1a   : > { %1036 = vmatmul.mubr.msk.bf16.vlgmr.msra.gmra.mrb[0].mxu0 %vm274_vm0, %v279_v3 }
  0x1b   : > { %1053 = vmatprep.mubr.msk.bf16.mxu0 %vm1172_vm1, %v1171_v0 }
  0x1c   : > { %557 = vrot.lane.b32.xlu1 %v1005_v11, %s1176_s24 }
  0x20   : > { %555 = vrot.lane.b32.xlu1 %v1004_v12, %s1176_s24 }
  0x24   : > { %692 = vrot.lane.b32.xlu1 %v1005_v11, %s1177_s25 }
  0x28   : > { %690 = vrot.lane.b32.xlu1 %v1004_v12, %s1177_s25 }
  0x86   : > { %v420_v22 = vpop.permute.xlu1 %419 }
  0x87   : > { %v425_v25 = vsel %vm274_vm0, %v420_v22, 0 }
  0x8a   : > { %v415_v23 = vpop.permute.xlu1 %414 }
  0x8e   : > { %v558_v27 = vpop.permute.xlu1 %557 }
  0x8f   : > { %v563_v29 = vsel %vm274_vm0, %v558_v27, 0 }
  0x92   : > { %v556_v28 = vpop.permute.xlu1 %555 }
  0x96   : > { %v693_v30 = vpop.permute.xlu1 %692 }
  0x97   : > { %v698_v31 = vsel %vm274_vm0, %v693_v30, 0 }
  0x9a   : > { %v691_v32 = vpop.permute.xlu1 %690 }
  0xed   : > { %v323_v5 = vpop.f32.mrb[0].mxu0 }
  0xee   : > { %v1037_v6 = vpop.f32.mrb[1].mxu0  ;;  %v330_v7 = vsel %vm274_vm0, %v323_v5, -inf }
  0xef   : > { %331 = vmax.xlane.f32.xlu0 %v330_v7  ;;  %v326_v8 = vpop.f32.mrb[2].mxu0 }
  0xf0   : > { %v1038_v9 = vpop.f32.mrb[3].mxu0 }
 0x17c   : > { %v332_v14 = vpop.xlane.xlu0 %331 }
 0x17d   : > { %v1269_v15 = vmax.f32 %v1266_v13, %v332_v14 }
 0x17f   : > { %v334_v16 = vsub.f32 %v1266_v13, %v1269_v15  ;;  %410 = vst.msk [vmem:[#allocation2] sm:$0xff] %vm265_vm2, %v1269_v15  ;;  %339 = vperm.xlu0 %1114, %v1269_v15  }
 0x1fe   : > { %v340_v19 = vpop.permute.xlu0 %339 }
 0x1ff   : > { %v342_v20 = vsub.f32 %v323_v5, %v340_v19 }
 0x201   : > { %v343_v21 = vmul.f32 1.442695, %v342_v20 }
 0x203   : > { %1123 = vpow2.f32 %v343_v21 }
 0x20d   : > { %v1285_v24 = vpop.eup %1123 }
 0x20e   : > { %v360_v26 = vpack.c.bf16 %v1285_v24, %v1285_v24  ;;  %v347_v30 = vsel %vm274_vm0, %v1285_v24, 0.0 }
 0x210   : > { %1042 = vmatmul.mubr.msk.bf16.vlgmr.msra.gmra.mrb[0].mxu1 %vm274_vm0, %v360_v26 }
 0x211   : > { %1046 = vmatpush3.bf16.xpose.msra.mxu1 %v425_v25  ;;  %1047 = vmatprep.mubr.msk.bf16.mxu1 %vm1172_vm1, %v1171_v0 }
 0x212   : > { %1057 = vmatprep.subr.bf16.mxu1 %v1171_v0 }
 0x218   : > { %1048 = vmatmul.mubr.msk.bf16.vlgmr.msra.gmra.mrb[4].mxu1 %vm274_vm0, %v415_v23 }
 0x219   : > { %1058 = vmatpush3.bf16.xpose.msra.mxu1 %v563_v29  ;;  %1059 = vmatprep.mubr.msk.bf16.mxu1 %vm1172_vm1, %v1171_v0 }
 0x21a   : > { %1069 = vmatprep.subr.bf16.mxu1 %v1171_v0 }
 0x220   : > { %1060 = vmatmul.mubr.msk.bf16.vlgmr.msra.gmra.mrb[8].mxu1 %vm274_vm0, %v556_v28  ;;  %v335_v28 = vmul.f32 1.442695, %v334_v16 }
 0x221   : > { %1070 = vmatpush3.bf16.xpose.msra.mxu1 %v698_v31  ;;  %1071 = vmatprep.mubr.msk.bf16.mxu1 %vm1172_vm1, %v1171_v0 }
 0x228   : > { %1072 = vmatmul.mubr.msk.bf16.vlgmr.msra.gmra.mrb[12].mxu1 %vm274_vm0, %v691_v32 }
 0x2e3   : > { %v1304_v33 = vpop.f32.mrb[0].mxu1 }
 0x2e4   : > { %v1043_v34 = vpop.f32.mrb[1].mxu1 }
 0x2e5   : > { %v405_v35 = vpop.f32.mrb[2].mxu1 }
 0x2e6   : > { %v1044_v36 = vpop.f32.mrb[3].mxu1  ;;  %v485_v35 = vld [vmem:[#allocation3 + $0x8] sm:$0xff] }
 0x2eb   : > { %v461_v37 = vpop.f32.mrb[4].mxu1 }
 0x2ec   : > { %v1049_v38 = vpop.f32.mrb[5].mxu1  ;;  %v469_v39 = vsel %vm274_vm0, %v461_v37, -inf }
 0x2ed   : > { %470 = vmax.xlane.f32.xlu1 %v469_v39  ;;  %v464_v40 = vpop.f32.mrb[6].mxu1  ;;  %v623_v39 = vld [vmem:[#allocation3 + $0x10] sm:$0xff] }
 0x2ee   : > { %v1050_v41 = vpop.f32.mrb[7].mxu1 }
 0x2f3   : > { %v599_v42 = vpop.f32.mrb[8].mxu1 }
 0x2f4   : > { %v1061_v43 = vpop.f32.mrb[9].mxu1  ;;  %v607_v44 = vsel %vm274_vm0, %v599_v42, -inf }
 0x2f5   : > { %608 = vmax.xlane.f32.xlu0 %v607_v44  ;;  %v602_v45 = vpop.f32.mrb[10].mxu1  ;;  %v758_v44 = vld [vmem:[#allocation3 + $0x18] sm:$0xff] }
 0x2f6   : > { %v1062_v46 = vpop.f32.mrb[11].mxu1  ;;  %v353_v45 = vld [vmem:[#allocation4] sm:$0xff] }
 0x2fb   : > { %v734_v47 = vpop.f32.mrb[12].mxu1 }
 0x2fc   : > { %v1073_v48 = vpop.f32.mrb[13].mxu1  ;;  %v742_v49 = vsel %vm274_vm0, %v734_v47, -inf }
 0x2fd   : > { %743 = vmax.xlane.f32.xlu1 %v742_v49  ;;  %v737_v50 = vpop.f32.mrb[14].mxu1  ;;  %v345_v49 = vld [vmem:[#allocation3] sm:$0xff] }
 0x2fe   : > { %v1074_v51 = vpop.f32.mrb[15].mxu1 }
 0x37a   : > { %v471_v53 = vpop.xlane.xlu1 %470 }
 0x37b   : > { %v1312_v54 = vmax.f32 %v1309_v52, %v471_v53 }
 0x37d   : > { %v473_v55 = vsub.f32 %v1309_v52, %v1312_v54  ;;  %554 = vst.msk [vmem:[#allocation2 + $0x8] sm:$0xff] %vm265_vm2, %v1312_v54  ;;  %478 = vperm.xlu1 %1115, %v1312_v54  }
 0x37f   : > { %v474_v13 = vmul.f32 1.442695, %v473_v55 }
 0x382   : > { %v609_v57 = vpop.xlane.xlu0 %608 }
 0x383   : > { %v1322_v58 = vmax.f32 %v1319_v56, %v609_v57 }
 0x385   : > { %v611_v59 = vsub.f32 %v1319_v56, %v1322_v58  ;;  %689 = vst.msk [vmem:[#allocation2 + $0x10] sm:$0xff] %vm265_vm2, %v1322_v58  ;;  %616 = vperm.xlu0 %1114, %v1322_v58  }
 0x387   : > { %v612_v16 = vmul.f32 1.442695, %v611_v59 }
 0x38a   : > { %v744_v61 = vpop.xlane.xlu1 %743 }
 0x38b   : > { %v745_v62 = vmax.f32 %v741_v60, %v744_v61 }
 0x38d   : > { %v746_v1 = vsub.f32 %v741_v60, %v745_v62  ;;  %824 = vst.msk [vmem:[#allocation2 + $0x18] sm:$0xff] %vm265_vm2, %v745_v62  ;;  %751 = vperm.xlu1 %1115, %v745_v62  }
 0x38f   : > { %v747_v31 = vmul.f32 1.442695, %v746_v1 }
 0x391   : > { %504 = vrot.lane.b32.xlu1 %v1007_v63, %s1175_s23 }
 0x395   : > { %639 = vrot.lane.b32.xlu1 %v1007_v63, %s1176_s24 }
 0x399   : > { %774 = vrot.lane.b32.xlu1 %v1007_v63, %s1177_s25  ;;  %v493_v63 = vld [vmem:[#allocation4 + $0x8] sm:$0xff] }
 0x3fc   : > { %v479_v2 = vpop.permute.xlu1 %478 }
 0x3fd   : > { %v481_v3 = vsub.f32 %v461_v37, %v479_v2 }
 0x3ff   : > { %v482_v4 = vmul.f32 1.442695, %v481_v3 }
 0x401   : > { %1125 = vpow2.f32 %v482_v4 }
 0x404   : > { %v617_v5 = vpop.permute.xlu0 %616 }
 0x405   : > { %v619_v6 = vsub.f32 %v599_v42, %v617_v5 }
 0x407   : > { %v620_v7 = vmul.f32 1.442695, %v619_v6 }
 0x409   : > { %1127 = vpow2.f32 %v620_v7 }
 0x40b   : > { %v1126_v8 = vpop.eup %1125 }
 0x40c   : > { %v752_v9 = vpop.permute.xlu1 %751  ;;  %v487_v10 = vsel %vm274_vm0, %v1126_v8, 0.0  ;;  %v500_v19 = vpack.c.bf16 %v1126_v8, %v1126_v8  ;;  %v631_v8 = vld [vmem:[#allocation4 + $0x10] sm:$0xff] }
 0x40d   : > { %v754_v11 = vsub.f32 %v734_v47, %v752_v9  ;;  %488 = vadd.xlane.f32.xlu0 %v487_v10 }
 0x40f   : > { %v755_v12 = vmul.f32 1.442695, %v754_v11 }
 0x410   : > { %v505_v14 = vpop.permute.xlu1 %504 }
 0x411   : > { %1129 = vpow2.f32 %v755_v12  ;;  %v510_v17 = vsel %vm364_vm3, %v505_v14, 0 }
 0x412   : > { %1052 = vmatpush3.bf16.msra.mxu0 %v510_v17  ;;  %1131 = vpow2.f32 %v335_v28 }
 0x413   : > { %v1128_v18 = vpop.eup %1127  ;;  %1063 = vmatprep.subr.bf16.mxu0 %v1171_v0  ;;  %1133 = vpow2.f32 %v747_v31 }
 0x414   : > { %v625_v20 = vsel %vm274_vm0, %v1128_v18, 0.0  ;;  %v640_v21 = vpop.permute.xlu1 %639  ;;  %v638_v26 = vpack.c.bf16 %v1128_v18, %v1128_v18  ;;  %1135 = vpow2.f32 %v474_v13 }
 0x415   : > { %626 = vadd.xlane.f32.xlu0 %v625_v20  ;;  %1054 = vmatmul.mubr.msk.bf16.vlgmr.msra.gmra.mrb[4].mxu0 %vm274_vm0, %v500_v19  ;;  %v645_v22 = vsel %vm364_vm3, %v640_v21, 0  ;;  %1137 = vpow2.f32 %v612_v16  ;;  %v766_v19 = vld [vmem:[#allocation4 + $0x18] sm:$0xff] }
 0x416   : > { %1064 = vmatpush3.bf16.msra.mxu0 %v645_v22  ;;  %1065 = vmatprep.mubr.msk.bf16.mxu0 %vm1172_vm1, %v1171_v0 }
 0x417   : > { %1075 = vmatprep.subr.bf16.mxu0 %v1171_v0 }
 0x418   : > { %v775_v23 = vpop.permute.xlu1 %774 }
 0x419   : > { %v780_v27 = vsel %vm364_vm3, %v775_v23, 0 }
 0x41b   : > { %v1130_v25 = vpop.eup %1129 }
 0x41c   : > { %v760_v29 = vsel %vm274_vm0, %v1130_v25, 0.0  ;;  %v773_v32 = vpack.c.bf16 %v1130_v25, %v1130_v25  ;;  %v1132_v15 = vpop.eup %1131 }
 0x41d   : > { %761 = vadd.xlane.f32.xlu1 %v760_v29  ;;  %1066 = vmatmul.mubr.msk.bf16.vlgmr.msra.gmra.mrb[8].mxu0 %vm274_vm0, %v638_v26  ;;  %v346_v54 = vmul.f32 %v1132_v15, %v345_v49 }
 0x41e   : > { %1076 = vmatpush3.bf16.msra.mxu0 %v780_v27  ;;  %1077 = vmatprep.mubr.msk.bf16.mxu0 %vm1172_vm1, %v1171_v0  ;;  %v1134_v0 = vpop.eup %1133 }
 0x41f   : > { %v1136_v34 = vpop.eup %1135  ;;  %v759_v46 = vmul.f32 %v1134_v0, %v758_v44 }
 0x420   : > { %v1138_v24 = vpop.eup %1137  ;;  %v486_v36 = vmul.f32 %v1136_v34, %v485_v35 }
 0x421   : > { %348 = vadd.xlane.f32.xlu1 %v347_v30  ;;  %v624_v40 = vmul.f32 %v1138_v24, %v623_v39 }
 0x425   : > { %1078 = vmatmul.mubr.msk.bf16.vlgmr.msra.gmra.mrb[12].mxu0 %vm274_vm0, %v773_v32 }
 0x42b   : > { %356 = vperm.xlu0 %1114, %v1132_v15  }
 0x432   : > { %769 = vperm.xlu1 %1115, %v1134_v0  }
 0x436   : > { %496 = vperm.xlu1 %1115, %v1136_v34  }
 0x43a   : > { %634 = vperm.xlu1 %1115, %v1138_v24  }
 0x49a   : > { %v489_v37 = vpop.xlane.xlu0 %488 }
 0x49b   : > { %v490_v38 = vadd.f32 %v489_v37, %v486_v36 }
 0x49d   : > { %491 = vst.msk [vmem:[#allocation3 + $0x8] sm:$0xff] %vm265_vm2, %v490_v38 }
 0x4a2   : > { %v627_v41 = vpop.xlane.xlu0 %626 }
 0x4a3   : > { %v628_v42 = vadd.f32 %v627_v41, %v624_v40 }
 0x4a4   : > { %v838_v43 = vld [vmem:[#allocation3 + $0x8] sm:$0xff] }
 0x4a5   : > { %629 = vst.msk [vmem:[#allocation3 + $0x10] sm:$0xff] %vm265_vm2, %v628_v42  ;;  %1139 = vrcp.f32 %v838_v43 }
 0x4aa   : > { %v762_v47 = vpop.xlane.xlu1 %761  ;;  %v357_v48 = vpop.permute.xlu0 %356 }
 0x4ab   : > { %v763_v50 = vadd.f32 %v762_v47, %v759_v46  ;;  %v359_v51 = vmul.f32 %v357_v48, %v353_v45 }
 0x4ac   : > { %v855_v52 = vld [vmem:[#allocation3 + $0x10] sm:$0xff] }
 0x4ad   : > { %764 = vst.msk [vmem:[#allocation3 + $0x18] sm:$0xff] %vm265_vm2, %v763_v50  ;;  %v408_v53 = vadd.f32 %v1304_v33, %v359_v51  ;;  %1141 = vrcp.f32 %v855_v52 }
 0x4ae   : > { %v349_v55 = vpop.xlane.xlu1 %348 }
 0x4af   : > { %v1140_v56 = vpop.eup %1139  ;;  %409 = vst.msk [vmem:[#allocation4] sm:$0xff] %vm274_vm0, %v408_v53  ;;  %v350_v57 = vadd.f32 %v349_v55, %v346_v54 }
 0x4b0   : > { %842 = vperm.xlu1 %1115, %v1140_v56  }
 0x4b1   : > { %352 = vst.msk [vmem:[#allocation3] sm:$0xff] %vm265_vm2, %v350_v57 }
 0x4b2   : > { %v770_v33 = vpop.permute.xlu1 %769 }
 0x4b3   : > { %v772_v20 = vmul.f32 %v770_v33, %v766_v19 }
 0x4b4   : > { %v864_v58 = vld [vmem:[#allocation3 + $0x18] sm:$0xff] }
 0x4b5   : > { %1143 = vrcp.f32 %v864_v58 }
 0x4b6   : > { %v497_v1 = vpop.permute.xlu1 %496  ;;  %v828_v34 = vld [vmem:[#allocation4] sm:$0xff] }
 0x4b7   : > { %v1142_v59 = vpop.eup %1141  ;;  %v499_v2 = vmul.f32 %v497_v1, %v493_v63 }
 0x4b8   : > { %859 = vperm.xlu1 %1115, %v1142_v59   ;;  %v829_v60 = vld [vmem:[#allocation3] sm:$0xff] }
 0x4b9   : > { %1145 = vrcp.f32 %v829_v60 }
 0x4ba   : > { %v635_v9 = vpop.permute.xlu1 %634 }
 0x4bb   : > { %v637_v10 = vmul.f32 %v635_v9, %v631_v8 }
 0x4bf   : > { %v1144_v61 = vpop.eup %1143 }
 0x4c0   : > { %868 = vperm.xlu0 %1114, %v1144_v61  }
 0x4c3   : > { %v1146_v62 = vpop.eup %1145 }
 0x4c4   : > { %833 = vperm.xlu0 %1114, %v1146_v62  }
 0x4e8   : > { %v546_v3 = vpop.f32.mrb[4].mxu0 }
 0x4e9   : > { %v552_v4 = vadd.f32 %v546_v3, %v499_v2  ;;  %v1055_v5 = vpop.f32.mrb[5].mxu0 }
 0x4ea   : > { %v549_v6 = vpop.f32.mrb[6].mxu0 }
 0x4eb   : > { %553 = vst.msk [vmem:[#allocation4 + $0x8] sm:$0xff] %vm274_vm0, %v552_v4  ;;  %v1056_v7 = vpop.f32.mrb[7].mxu0 }
 0x4f0   : > { %v681_v11 = vpop.f32.mrb[8].mxu0 }
 0x4f1   : > { %v687_v12 = vadd.f32 %v681_v11, %v637_v10  ;;  %v1067_v14 = vpop.f32.mrb[9].mxu0 }
 0x4f2   : > { %v684_v17 = vpop.f32.mrb[10].mxu0  ;;  %v837_v28 = vld [vmem:[#allocation4 + $0x8] sm:$0xff] }
 0x4f3   : > { %688 = vst.msk [vmem:[#allocation4 + $0x10] sm:$0xff] %vm274_vm0, %v687_v12  ;;  %v1068_v18 = vpop.f32.mrb[11].mxu0 }
 0x4f8   : > { %v816_v21 = vpop.f32.mrb[12].mxu0 }
 0x4f9   : > { %v822_v22 = vadd.f32 %v816_v21, %v772_v20  ;;  %v1079_v23 = vpop.f32.mrb[13].mxu0 }
 0x4fa   : > { %v819_v25 = vpop.f32.mrb[14].mxu0  ;;  %v854_v0 = vld [vmem:[#allocation4 + $0x10] sm:$0xff] }
 0x4fb   : > { %823 = vst.msk [vmem:[#allocation4 + $0x18] sm:$0xff] %vm274_vm0, %v822_v22  ;;  %v1080_v26 = vpop.f32.mrb[15].mxu0 }
 0x502   : > { %v863_v30 = vld [vmem:[#allocation4 + $0x18] sm:$0xff] }
 0x52f   : > { %v843_v27 = vpop.permute.xlu1 %842 }
 0x530   : > { %v845_v31 = vmul.f32 %v843_v27, %v837_v28 }
 0x537   : > { %v860_v16 = vpop.permute.xlu1 %859 }
 0x538   : > { %v862_v35 = vmul.f32 %v860_v16, %v854_v0 }
 0x53f   : > { %v869_v29 = vpop.permute.xlu0 %868 }
 0x540   : > { %v871_v32 = vmul.f32 %v869_v29, %v863_v30 }
 0x542   : > { %v1116_v13 = vpack.i.bf16 %v871_v32, %v845_v31 }
 0x543   : > { %v834_v15 = vpop.permute.xlu0 %833 }
 0x544   : > { %1117 = vrot.lane.b32.xlu0 %v1116_v13, %s1178_s29  ;;  %v836_v36 = vmul.f32 %v834_v15, %v828_v34 }
 0x5b6   : > { %v1118_v24 = vpop.permute.xlu0 %1117 }
 0x5b7   : > { %v1120_v37 = vunpack.i.h.bf16 %v1118_v24  ;;  %v1119_v38 = vunpack.i.l.bf16 %v1118_v24 }
 0x5b9   : > { %v850_v39 = vsel %vm274_vm0, %v836_v36, %v1119_v38  ;;  %v876_v40 = vsel %vm274_vm0, %v862_v35, %v1120_v37 }
 0x5ba   : > { %v851_v41 = vpack.c.bf16 %v850_v39, %v850_v39  ;;  %v1016_v42 = vpack.c.bf16 %v876_v40, %v876_v40 }
 0x5bc   : > { %881 = vrot.lane.b32.xlu0 %v1016_v42, %s1179_s6  ;;  %853 = vst.msk [vmem:[%s259_s5] sm:$0xf] %vm852_vm4, %v851_v41 }
 0x62e   : > { %v882_v43 = vpop.permute.xlu0 %881 }
 0x62f   : > { %885 = vst.msk [vmem:[%s259_s5] sm:$0xf] %vm884_vm5, %v882_v43 }
 0x630 PF: > { %s13_s14 = sadd.s32 1, %s1169_s14   ;;  %s1386_s12 = smov %s1165_s13 }
 0x631   : > { %p10_p5 = scmp.ge.s32.totalorder %s13_s14, 4   ;;  %s1387_s13 = smov %s1389_s15 }
 0x633   :  { %12 = sbr.rel (!%p10_p5) target bundleno = 2 (0x2), region = 85 }

// kernel: transformer_encoder.14
= control target key start
LH: loop header
LB: loop body
LE: loop exit
PB: predicated region body
PF: predicated region fallthrough
CT: control target
= control target key end

     0   :  { %v227_v0 = vmov 0.0   ;;  %vm228_vm0 = vmmov 0   ;;  %vm70_vm1 = vcmask 523264   ;;  %vm121_vm2 = vcmask 261120   ;;  %s301_s1 = inlined_call_operand.vmem [shape: bf16[64,32], index: 1, kind: input, shape index: {}]   ;;  %s302_s0 = inlined_call_operand.vmem [shape: bf16[16,64], index: 0, kind: input, shape index: {}]   ;;  %s303_s3 = inlined_call_operand.vmem [shape: bf16[16,32], index: 3, kind: input, shape index: {}]   ;;  %s304_s2 = inlined_call_operand.vmem [shape: f32[1,32], index: 2, kind: input, shape index: {}]   ;;  %s305_s4 = inlined_call_operand.vmem [shape: f32[1,32], index: 4, kind: input, shape index: {}]   ;;  %s306_s5 = inlined_call_operand.vmem [shape: f32[1,32], index: 5, kind: input, shape index: {}]   ;;  %s307_s6 = inlined_call_operand.vmem [shape: bf16[16,32], index: 6, kind: output, shape index: {}]  }
   0x1   :  { %204 = vmatprep.subr.bf16.mxu0 %v227_v0  ;;  %v218_v1 = vld [vmem:[%s301_s1] sm:$0xff]   ;;  %212 = vmatprep.mubr.msk.bf16.mxu0 %vm228_vm0, %v227_v0  ;;  %v219_v2 = vld [vmem:[%s301_s1 + $0x8] sm:$0xff]   ;;  %v220_v3 = vld [vmem:[%s301_s1 + $0x10] sm:$0xff]   ;;  %vm175_vm3 = vcmask 257024  }
   0x2   :  { %205 = vmatpush3.bf16.msra.mxu0 %v218_v1  ;;  %v221_v4 = vld [vmem:[%s301_s1 + $0x18] sm:$0xff]   ;;  %v222_v5 = vld [vmem:[%s302_s0] sm:$0xff]  }
   0x3   :  { %206 = vmatprep.subr.bf16.mxu0 %v227_v0  ;;  %v196_v6 = vld [vmem:[%s303_s3] sm:$0xff]  }
   0x4   :  { %v182_v7 = vld [vmem:[%s304_s2] ss:$0 sm:$0xff]  ;;  %v197_v8 = vunpack.c.l.bf16 %v196_v6  ;;  %v198_v12 = vunpack.c.h.bf16 %v196_v6 }
   0x5   :  { %v189_v37 = vld [vmem:[%s305_s4] ss:$0 sm:$0xff] }
   0x6   :  { %207 = vmatpush3.bf16.msra.mxu0 %v219_v2  ;;  %v190_v39 = vld [vmem:[%s306_s5] ss:$0 sm:$0xff] }
   0x7   :  { %208 = vmatprep.subr.bf16.mxu0 %v227_v0 }
   0xa   :  { %209 = vmatpush3.bf16.msra.mxu0 %v220_v3 }
   0xb   :  { %210 = vmatprep.subr.bf16.mxu0 %v227_v0 }
   0xe   :  { %211 = vmatpush3.bf16.msra.mxu0 %v221_v4 }
  0x11   :  { %213 = vmatmul.mubr.msk.bf16.vlgmr.msra.gmra.mrb[0].mxu0 %vm70_vm1, %v222_v5 }
  0xe4   :  { %v108_v9 = vpop.f32.mrb[0].mxu0 }
  0xe5   :  { %v109_v10 = vadd.f32 %v182_v7, %v108_v9  ;;  %v214_v11 = vpop.f32.mrb[1].mxu0 }
  0xe6   :  { %v111_v13 = vpop.f32.mrb[2].mxu0 }
  0xe7   :  { %v112_v14 = vadd.f32 %v182_v7, %v111_v13  ;;  %v215_v15 = vpop.f32.mrb[3].mxu0  ;;  %v119_v16 = vadd.f32 %v197_v8, %v109_v10 }
  0xe9   :  { %v122_v17 = vsel %vm121_vm2, %v119_v16, 0.0  ;;  %v120_v18 = vadd.f32 %v198_v12, %v112_v14 }
  0xea   :  { %123 = vadd.xlane.f32.xlu0 %v122_v17 }
  0xeb   :  { %v125_v19 = vsel %vm121_vm2, %v120_v18, 0.0 }
  0xee   :  { %126 = vadd.xlane.f32.xlu0 %v125_v19 }
 0x177   :  { %v124_v20 = vpop.xlane.xlu0 %123 }
 0x178   :  { %v129_v21 = vmul.f32 0.03125, %v124_v20 }
 0x17a   :  { %v131_v22 = vsub.f32 %v119_v16, %v129_v21 }
 0x17b   :  { %v127_v23 = vpop.xlane.xlu0 %126 }
 0x17c   :  { %v130_v24 = vmul.f32 0.03125, %v127_v23  ;;  %v133_v25 = vmul.f32 %v131_v22, %v131_v22 }
 0x17e   :  { %v132_v26 = vsub.f32 %v120_v18, %v130_v24  ;;  %v135_v27 = vsel %vm121_vm2, %v133_v25, 0.0 }
 0x17f   :  { %136 = vadd.xlane.f32.xlu1 %v135_v27 }
 0x180   :  { %v134_v28 = vmul.f32 %v132_v26, %v132_v26 }
 0x182   :  { %v138_v29 = vsel %vm121_vm2, %v134_v28, 0.0 }
 0x183   :  { %139 = vadd.xlane.f32.xlu1 %v138_v29 }
 0x20c   :  { %v137_v30 = vpop.xlane.xlu1 %136 }
 0x20d   :  { %v141_v31 = vmul.f32 0.03125, %v137_v30 }
 0x20f   :  { %v143_v32 = vadd.f32 1e-05, %v141_v31 }
 0x210   :  { %v140_v33 = vpop.xlane.xlu1 %139 }
 0x211   :  { %223 = vrsqrt.f32 %v143_v32  ;;  %v142_v34 = vmul.f32 0.03125, %v140_v33 }
 0x213   :  { %v144_v35 = vadd.f32 1e-05, %v142_v34 }
 0x215   :  { %225 = vrsqrt.f32 %v144_v35 }
 0x21b   :  { %v224_v36 = vpop.eup %223 }
 0x21c   :  { %v147_v38 = vmul.f32 %v224_v36, %v131_v22 }
 0x21e   :  { %v156_v40 = vmul.f32 %v189_v37, %v147_v38 }
 0x21f   :  { %v226_v41 = vpop.eup %225 }
 0x220   :  { %v165_v42 = vadd.f32 %v190_v39, %v156_v40  ;;  %v148_v43 = vmul.f32 %v226_v41, %v132_v26 }
 0x222   :  { %v193_v44 = vpack.c.bf16 %v165_v42, %v165_v42  ;;  %v157_v45 = vmul.f32 %v189_v37, %v148_v43 }
 0x224   :  { %176 = vst.msk [vmem:[%s307_s6] sm:$0xf] %vm175_vm3, %v193_v44  ;;  %v166_v46 = vadd.f32 %v190_v39, %v157_v45 }
 0x226   :  { %v194_v47 = vpack.c.bf16 %v166_v46, %v166_v46 }
 0x228   :  { %177 = vst.msk [vmem:[%s307_s6 + $0x4] sm:$0xf] %vm175_vm3, %v194_v47 }

</bundles_post_ra>
